<compile_context>
chip_gen: v7x
topology: tpu7x:2x2x1
jax: 0.10.0
libtpu: 0.0.40
codegen_flags: <defaults>
</compile_context>

<pallas_src>
import functools

import numpy as np
import jax
import jax.numpy as jnp
from jax.experimental import pallas as pl
from jax.experimental.pallas import tpu as pltpu

EPS = 1e-5          # nn.InstanceNorm2d default eps
LEAK = 0.2          # DEFAULT_RELU_LEAKINESS


# ---------------------------------------------------------------------------
# Host-side helpers (pure data layout, no compute)
# ---------------------------------------------------------------------------
def make_tap_masks(H, W):
    """Zero-'same'-padding validity masks for the 9 taps of a 3x3 conv.

    Shape (9, 1, H*W) float32; tap order t = (kh)*3 + (kw), kh,kw in {0,1,2},
    i.e. offsets (di, dj) = (kh-1, kw-1).
    """
    HW = H * W
    h = np.arange(HW) // W
    w = np.arange(HW) % W
    masks = np.zeros((9, 1, HW), np.float32)
    t = 0
    for di in (-1, 0, 1):
        for dj in (-1, 0, 1):
            valid = (h + di >= 0) & (h + di < H) & (w + dj >= 0) & (w + dj < W)
            masks[t, 0, :] = valid.astype(np.float32)
            t += 1
    return jnp.asarray(masks)


def torch_conv3x3_weight_to_taps(w_oihw):
    """(Cout, Cin, 3, 3) -> (9, Cout, Cin), tap t = kh*3 + kw."""
    Cout, Cin, kh, kw = w_oihw.shape
    return jnp.transpose(w_oihw, (2, 3, 0, 1)).reshape(kh * kw, Cout, Cin)


# ---------------------------------------------------------------------------
# Fused Pallas kernel
# ---------------------------------------------------------------------------
def _conv3x3_in_lrelu(x, w_taps_ref, b, masks_ref, H, W):
    """x: (Cin, HW) f32; w_taps_ref: (9, Cout, Cin); b: (Cout, 1) -> (Cout, HW)."""
    HW = H * W
    Cout = w_taps_ref.shape[1]
    y = jnp.zeros((Cout, HW), jnp.float32)
    t = 0
    for di in (-1, 0, 1):
        for dj in (-1, 0, 1):
            offset = di * W + dj
            if offset == 0:
                xs = x                                   # center tap: no shift, all-valid
            else:
                # shifted(p) = x(p + offset) with zero 'same' padding outside the image
                xs = pltpu.roll(x, shift=(-offset) % HW, axis=1) * masks_ref[t]
            y = y + jnp.dot(w_taps_ref[t], xs, preferred_element_type=jnp.float32)
            t += 1
    y = y + b                                            # conv bias
    # InstanceNorm2d(affine=False): per-sample per-channel biased stats over spatial dims.
    mean = jnp.mean(y, axis=1, keepdims=True)                        # (Cout, 1)
    var = jnp.maximum(jnp.mean(y * y, axis=1, keepdims=True) - mean * mean, 0.0)
    yn = (y - mean) * jax.lax.rsqrt(var + EPS)
    # LeakyReLU(0.2)
    return jnp.where(yn >= 0, yn, LEAK * yn)


def _fused_disc_kernel(x_ref, masks_ref, w1_ref, b1_ref, w2_ref, b2_ref,
                       wf_ref, bf_ref, logit_ref, prob_ref, *, H, W):
    # x_ref:     (1, C0, HW)       activations of one sample, HW on lanes
    # masks_ref: (9, 1, HW)        padding masks (shared by both 3x3 layers)
    # w1_ref:    (9, C1, C0)   b1_ref: (C1, 1)
    # w2_ref:    (9, C2, C1)   b2_ref: (C2, 1)
    # wf_ref:    (C2, 1)       bf_ref: (1, 1)
    # logit_ref / prob_ref: (1, 1, HW)
    x0 = x_ref[0]                                                    # (C0, HW)
    x1 = _conv3x3_in_lrelu(x0, w1_ref, b1_ref[...], masks_ref, H, W)  # (C1, HW)
    x2 = _conv3x3_in_lrelu(x1, w2_ref, b2_ref[...], masks_ref, H, W)  # (C2, HW)
    # Final 1x1 conv to 1 channel: sublane reduce instead of an m=1 matmul.
    logits = jnp.sum(x2 * wf_ref[...], axis=0, keepdims=True) + bf_ref[...]   # (1, HW)
    logit_ref[0] = logits
    prob_ref[0] = jax.nn.sigmoid(logits)


# ---------------------------------------------------------------------------
# Public forward (NCHW in / NCHW out, matching the PyTorch module)
# ---------------------------------------------------------------------------
def cnn_discriminator_forward(x_nchw, params):
    N, C0, H, W = x_nchw.shape
    HW = H * W
    (w1, b1), (w2, b2) = params["convs"]
    wf, bf = params["final"]
    C1, C2 = w1.shape[0], w2.shape[0]

    # Pure layout work on the host / XLA side (all reshapes, no transposed HBM traffic).
    x = x_nchw.reshape(N, C0, HW)                        # (N, C, HW): HW on lanes
    masks = make_tap_masks(H, W)                         # (9, 1, HW)
    w1_t = torch_conv3x3_weight_to_taps(w1)              # (9, C1, C0)
    w2_t = torch_conv3x3_weight_to_taps(w2)              # (9, C2, C1)
    b1_c = b1.reshape(C1, 1)
    b2_c = b2.reshape(C2, 1)
    wf_c = wf.reshape(C2, 1)                             # (1, C2, 1, 1) -> (C2, 1)
    bf_c = bf.reshape(1, 1)

    kernel = functools.partial(_fused_disc_kernel, H=H, W=W)
    logits, prob = pl.pallas_call(
        kernel,
        out_shape=(
            jax.ShapeDtypeStruct((N, 1, HW), jnp.float32),
            jax.ShapeDtypeStruct((N, 1, HW), jnp.float32),
        ),
        grid_spec=pltpu.PrefetchScalarGridSpec(
            num_scalar_prefetch=0,
            grid=(N,),
            in_specs=[
                pl.BlockSpec((1, C0, HW), lambda b: (b, 0, 0)),   # per-sample activations
                pl.BlockSpec((9, 1, HW), lambda b: (0, 0, 0)),    # masks (resident)
                pl.BlockSpec((9, C1, C0), lambda b: (0, 0, 0)),   # layer-1 weights (resident)
                pl.BlockSpec((C1, 1), lambda b: (0, 0)),
                pl.BlockSpec((9, C2, C1), lambda b: (0, 0, 0)),   # layer-2 weights (resident)
                pl.BlockSpec((C2, 1), lambda b: (0, 0)),
                pl.BlockSpec((C2, 1), lambda b: (0, 0)),          # final 1x1 weight
                pl.BlockSpec((1, 1), lambda b: (0, 0)),           # final bias
            ],
            out_specs=[
                pl.BlockSpec((1, 1, HW), lambda b: (b, 0, 0)),    # lane-dense stores
                pl.BlockSpec((1, 1, HW), lambda b: (b, 0, 0)),
            ],
        ),
        compiler_params=pltpu.CompilerParams(
            dimension_semantics=("parallel",)),                   # v7x megacore over batch
    )(x, masks, w1_t, b1_c, w2_t, b2_c, wf_c, bf_c)

    return {
        "prob": prob.reshape(N, 1, H, W),
        "logits": logits.reshape(N, 1, H, W),
    }


# ---------------------------------------------------------------------------
# Pure-JAX reference (semantics check)
# ---------------------------------------------------------------------------
def reference_forward(x, params):
    y = x
    for w, b in params["convs"]:
        k = w.shape[-1]
        pad = (k - 1) // 2
        y = jax.lax.conv_general_dilated(
            y, w, window_strides=(1, 1), padding=((pad, pad), (pad, pad)),
            dimension_numbers=("NCHW", "OIHW", "NCHW"),
            precision=jax.lax.Precision.HIGHEST)
        y = y + b.reshape(1, -1, 1, 1)
        mean = jnp.mean(y, axis=(2, 3), keepdims=True)
        var = jnp.mean(jnp.square(y - mean), axis=(2, 3), keepdims=True)
        y = (y - mean) * jax.lax.rsqrt(var + EPS)
        y = jnp.where(y >= 0, y, LEAK * y)
    wf, bf = params["final"]
    y = jax.lax.conv_general_dilated(
        y, wf, window_strides=(1, 1), padding="VALID",
        dimension_numbers=("NCHW", "OIHW", "NCHW"),
        precision=jax.lax.Precision.HIGHEST) + bf.reshape(1, -1, 1, 1)
    return {"logits": y, "prob": jax.nn.sigmoid(y)}


# ---------------------------------------------------------------------------
# Deterministic parameter init (weight_init_params: conv weights ~ N(0, 0.02))
# ---------------------------------------------------------------------------
def init_params(num_inputs, num_filters_per_layer, kernel_size, key):
    params = {"convs": [], "final": None}
    in_ch = num_inputs
    for nf in num_filters_per_layer:
        key, wk = jax.random.split(key)
        w = 0.02 * jax.random.normal(wk, (nf, in_ch, kernel_size, kernel_size), jnp.float32)
        b = jnp.zeros((nf,), jnp.float32)
        params["convs"].append((w, b))
        in_ch = nf
    key, wk = jax.random.split(key)
    wf = 0.02 * jax.random.normal(wk, (1, in_ch, 1, 1), jnp.float32)
    bf = jnp.zeros((1,), jnp.float32)
    params["final"] = (wf, bf)
    return params


if __name__ == "__main__":
    key = jax.random.PRNGKey(0)
    key, xk, pk = jax.random.split(key, 3)

    # Small shapes consistent with the module: batch=2, channels=4, spatial=16x16.
    x = jax.random.normal(xk, (2, 4, 16, 16), jnp.float32)
    params = init_params(num_inputs=4, num_filters_per_layer=[8, 16], kernel_size=3, key=pk)

    out = jax.jit(functools.partial(cnn_discriminator_forward, params=params))(x)
    jax.block_until_ready(out)

    ref = reference_forward(x, params)
    assert out["logits"].shape == (2, 1, 16, 16)
    assert out["prob"].shape == (2, 1, 16, 16)
    assert bool(jnp.all(jnp.isfinite(out["logits"])))
    assert bool(jnp.allclose(out["logits"], ref["logits"], atol=5e-3, rtol=5e-3))
    assert bool(jnp.allclose(out["prob"], ref["prob"], atol=5e-3, rtol=5e-3))

    print("KERNEL_OK")
</pallas_src>

<mosaic_0001>
module attributes {stable_mosaic.version = 11 : i64} {
  func.func @_fused_disc_kernel(%arg0: i32, %arg1: memref<1x4x256xf32, #tpu.memory_space<vmem>>, %arg2: memref<9x1x256xf32, #tpu.memory_space<vmem>>, %arg3: memref<9x8x4xf32, #tpu.memory_space<vmem>>, %arg4: memref<8x1xf32, #tpu.memory_space<vmem>>, %arg5: memref<9x16x8xf32, #tpu.memory_space<vmem>>, %arg6: memref<16x1xf32, #tpu.memory_space<vmem>>, %arg7: memref<16x1xf32, #tpu.memory_space<vmem>>, %arg8: memref<1x1xf32, #tpu.memory_space<vmem>>, %arg9: memref<1x1x256xf32, #tpu.memory_space<vmem>>, %arg10: memref<1x1x256xf32, #tpu.memory_space<vmem>>) attributes {dimension_semantics = [#tpu.dimension_semantics<parallel>], iteration_bounds = array<i64: 2>, scalar_prefetch = 0 : i64, scratch_operands = 0 : i64, tpu.core_type = #tpu.core_type<tc>, window_params = [{transform_indices = @transform_0, window_bounds = array<i64: 1, 4, 256>}, {pipeline_mode = #tpu.pipeline_mode<synchronous>, transform_indices = @transform_1, window_bounds = array<i64: 9, 1, 256>}, {pipeline_mode = #tpu.pipeline_mode<synchronous>, transform_indices = @transform_2, window_bounds = array<i64: 9, 8, 4>}, {pipeline_mode = #tpu.pipeline_mode<synchronous>, transform_indices = @transform_3, window_bounds = array<i64: 8, 1>}, {pipeline_mode = #tpu.pipeline_mode<synchronous>, transform_indices = @transform_4, window_bounds = array<i64: 9, 16, 8>}, {pipeline_mode = #tpu.pipeline_mode<synchronous>, transform_indices = @transform_5, window_bounds = array<i64: 16, 1>}, {pipeline_mode = #tpu.pipeline_mode<synchronous>, transform_indices = @transform_6, window_bounds = array<i64: 16, 1>}, {pipeline_mode = #tpu.pipeline_mode<synchronous>, transform_indices = @transform_7, window_bounds = array<i64: 1, 1>}, {transform_indices = @transform_8, window_bounds = array<i64: 1, 1, 256>}, {transform_indices = @transform_9, window_bounds = array<i64: 1, 1, 256>}]} {
    %c0 = arith.constant 0 : index
    %c0_0 = arith.constant 0 : index
    %c0_1 = arith.constant 0 : index
    %0 = vector.load %arg1[%c0, %c0_0, %c0_1] : memref<1x4x256xf32, #tpu.memory_space<vmem>>, vector<1x4x256xf32>
    %1 = vector.shape_cast %0 : vector<1x4x256xf32> to vector<4x256xf32>
    %c0_2 = arith.constant 0 : index
    %c0_3 = arith.constant 0 : index
    %2 = vector.load %arg4[%c0_2, %c0_3] : memref<8x1xf32, #tpu.memory_space<vmem>>, vector<8x1xf32>
    %cst = arith.constant 0.000000e+00 : f32
    %3 = vector.broadcast %cst : f32 to vector<8x256xf32>
    %c17_i32 = arith.constant 17 : i32
    %4 = tpu.dynamic_rotate %1 by %c17_i32 dim 1 : vector<4x256xf32>, i32 -> vector<4x256xf32>
    %c0_4 = arith.constant 0 : index
    %c0_5 = arith.constant 0 : index
    %c0_6 = arith.constant 0 : index
    %5 = vector.load %arg2[%c0_4, %c0_5, %c0_6] : memref<9x1x256xf32, #tpu.memory_space<vmem>>, vector<1x1x256xf32>
    %6 = vector.shape_cast %5 : vector<1x1x256xf32> to vector<1x256xf32>
    %7 = vector.broadcast %6 : vector<1x256xf32> to vector<4x256xf32>
    %8 = arith.mulf %4, %7 : vector<4x256xf32>
    %c0_7 = arith.constant 0 : index
    %c0_8 = arith.constant 0 : index
    %c0_9 = arith.constant 0 : index
    %9 = vector.load %arg3[%c0_7, %c0_8, %c0_9] : memref<9x8x4xf32, #tpu.memory_space<vmem>>, vector<1x8x4xf32>
    %10 = vector.shape_cast %9 : vector<1x8x4xf32> to vector<8x4xf32>
    %cst_10 = arith.constant dense<0.000000e+00> : vector<8x256xf32>
    %11 = tpu.matmul %10, %8, %cst_10 {dimension_numbers = #tpu.dot_dimension_numbers<[1], [0], [0], [1], [0, 0, 1, 1], [], []>} : vector<8x4xf32>, vector<4x256xf32>, vector<8x256xf32> -> vector<8x256xf32>
    %12 = arith.addf %3, %11 : vector<8x256xf32>
    %c16_i32 = arith.constant 16 : i32
    %13 = tpu.dynamic_rotate %1 by %c16_i32 dim 1 : vector<4x256xf32>, i32 -> vector<4x256xf32>
    %c1 = arith.constant 1 : index
    %c0_11 = arith.constant 0 : index
    %c0_12 = arith.constant 0 : index
    %14 = vector.load %arg2[%c1, %c0_11, %c0_12] : memref<9x1x256xf32, #tpu.memory_space<vmem>>, vector<1x1x256xf32>
    %15 = vector.shape_cast %14 : vector<1x1x256xf32> to vector<1x256xf32>
    %16 = vector.broadcast %15 : vector<1x256xf32> to vector<4x256xf32>
    %17 = arith.mulf %13, %16 : vector<4x256xf32>
    %c1_13 = arith.constant 1 : index
    %c0_14 = arith.constant 0 : index
    %c0_15 = arith.constant 0 : index
    %18 = vector.load %arg3[%c1_13, %c0_14, %c0_15] : memref<9x8x4xf32, #tpu.memory_space<vmem>>, vector<1x8x4xf32>
    %19 = vector.shape_cast %18 : vector<1x8x4xf32> to vector<8x4xf32>
    %cst_16 = arith.constant dense<0.000000e+00> : vector<8x256xf32>
    %20 = tpu.matmul %19, %17, %cst_16 {dimension_numbers = #tpu.dot_dimension_numbers<[1], [0], [0], [1], [0, 0, 1, 1], [], []>} : vector<8x4xf32>, vector<4x256xf32>, vector<8x256xf32> -> vector<8x256xf32>
    %21 = arith.addf %12, %20 : vector<8x256xf32>
    %c15_i32 = arith.constant 15 : i32
    %22 = tpu.dynamic_rotate %1 by %c15_i32 dim 1 : vector<4x256xf32>, i32 -> vector<4x256xf32>
    %c2 = arith.constant 2 : index
    %c0_17 = arith.constant 0 : index
    %c0_18 = arith.constant 0 : index
    %23 = vector.load %arg2[%c2, %c0_17, %c0_18] : memref<9x1x256xf32, #tpu.memory_space<vmem>>, vector<1x1x256xf32>
    %24 = vector.shape_cast %23 : vector<1x1x256xf32> to vector<1x256xf32>
    %25 = vector.broadcast %24 : vector<1x256xf32> to vector<4x256xf32>
    %26 = arith.mulf %22, %25 : vector<4x256xf32>
    %c2_19 = arith.constant 2 : index
    %c0_20 = arith.constant 0 : index
    %c0_21 = arith.constant 0 : index
    %27 = vector.load %arg3[%c2_19, %c0_20, %c0_21] : memref<9x8x4xf32, #tpu.memory_space<vmem>>, vector<1x8x4xf32>
    %28 = vector.shape_cast %27 : vector<1x8x4xf32> to vector<8x4xf32>
    %cst_22 = arith.constant dense<0.000000e+00> : vector<8x256xf32>
    %29 = tpu.matmul %28, %26, %cst_22 {dimension_numbers = #tpu.dot_dimension_numbers<[1], [0], [0], [1], [0, 0, 1, 1], [], []>} : vector<8x4xf32>, vector<4x256xf32>, vector<8x256xf32> -> vector<8x256xf32>
    %30 = arith.addf %21, %29 : vector<8x256xf32>
    %c1_i32 = arith.constant 1 : i32
    %31 = tpu.dynamic_rotate %1 by %c1_i32 dim 1 : vector<4x256xf32>, i32 -> vector<4x256xf32>
    %c3 = arith.constant 3 : index
    %c0_23 = arith.constant 0 : index
    %c0_24 = arith.constant 0 : index
    %32 = vector.load %arg2[%c3, %c0_23, %c0_24] : memref<9x1x256xf32, #tpu.memory_space<vmem>>, vector<1x1x256xf32>
    %33 = vector.shape_cast %32 : vector<1x1x256xf32> to vector<1x256xf32>
    %34 = vector.broadcast %33 : vector<1x256xf32> to vector<4x256xf32>
    %35 = arith.mulf %31, %34 : vector<4x256xf32>
    %c3_25 = arith.constant 3 : index
    %c0_26 = arith.constant 0 : index
    %c0_27 = arith.constant 0 : index
    %36 = vector.load %arg3[%c3_25, %c0_26, %c0_27] : memref<9x8x4xf32, #tpu.memory_space<vmem>>, vector<1x8x4xf32>
    %37 = vector.shape_cast %36 : vector<1x8x4xf32> to vector<8x4xf32>
    %cst_28 = arith.constant dense<0.000000e+00> : vector<8x256xf32>
    %38 = tpu.matmul %37, %35, %cst_28 {dimension_numbers = #tpu.dot_dimension_numbers<[1], [0], [0], [1], [0, 0, 1, 1], [], []>} : vector<8x4xf32>, vector<4x256xf32>, vector<8x256xf32> -> vector<8x256xf32>
    %39 = arith.addf %30, %38 : vector<8x256xf32>
    %c4 = arith.constant 4 : index
    %c0_29 = arith.constant 0 : index
    %c0_30 = arith.constant 0 : index
    %40 = vector.load %arg3[%c4, %c0_29, %c0_30] : memref<9x8x4xf32, #tpu.memory_space<vmem>>, vector<1x8x4xf32>
    %41 = vector.shape_cast %40 : vector<1x8x4xf32> to vector<8x4xf32>
    %cst_31 = arith.constant dense<0.000000e+00> : vector<8x256xf32>
    %42 = tpu.matmul %41, %1, %cst_31 {dimension_numbers = #tpu.dot_dimension_numbers<[1], [0], [0], [1], [0, 0, 1, 1], [], []>} : vector<8x4xf32>, vector<4x256xf32>, vector<8x256xf32> -> vector<8x256xf32>
    %43 = arith.addf %39, %42 : vector<8x256xf32>
    %c255_i32 = arith.constant 255 : i32
    %44 = tpu.dynamic_rotate %1 by %c255_i32 dim 1 : vector<4x256xf32>, i32 -> vector<4x256xf32>
    %c5 = arith.constant 5 : index
    %c0_32 = arith.constant 0 : index
    %c0_33 = arith.constant 0 : index
    %45 = vector.load %arg2[%c5, %c0_32, %c0_33] : memref<9x1x256xf32, #tpu.memory_space<vmem>>, vector<1x1x256xf32>
    %46 = vector.shape_cast %45 : vector<1x1x256xf32> to vector<1x256xf32>
    %47 = vector.broadcast %46 : vector<1x256xf32> to vector<4x256xf32>
    %48 = arith.mulf %44, %47 : vector<4x256xf32>
    %c5_34 = arith.constant 5 : index
    %c0_35 = arith.constant 0 : index
    %c0_36 = arith.constant 0 : index
    %49 = vector.load %arg3[%c5_34, %c0_35, %c0_36] : memref<9x8x4xf32, #tpu.memory_space<vmem>>, vector<1x8x4xf32>
    %50 = vector.shape_cast %49 : vector<1x8x4xf32> to vector<8x4xf32>
    %cst_37 = arith.constant dense<0.000000e+00> : vector<8x256xf32>
    %51 = tpu.matmul %50, %48, %cst_37 {dimension_numbers = #tpu.dot_dimension_numbers<[1], [0], [0], [1], [0, 0, 1, 1], [], []>} : vector<8x4xf32>, vector<4x256xf32>, vector<8x256xf32> -> vector<8x256xf32>
    %52 = arith.addf %43, %51 : vector<8x256xf32>
    %c241_i32 = arith.constant 241 : i32
    %53 = tpu.dynamic_rotate %1 by %c241_i32 dim 1 : vector<4x256xf32>, i32 -> vector<4x256xf32>
    %c6 = arith.constant 6 : index
    %c0_38 = arith.constant 0 : index
    %c0_39 = arith.constant 0 : index
    %54 = vector.load %arg2[%c6, %c0_38, %c0_39] : memref<9x1x256xf32, #tpu.memory_space<vmem>>, vector<1x1x256xf32>
    %55 = vector.shape_cast %54 : vector<1x1x256xf32> to vector<1x256xf32>
    %56 = vector.broadcast %55 : vector<1x256xf32> to vector<4x256xf32>
    %57 = arith.mulf %53, %56 : vector<4x256xf32>
    %c6_40 = arith.constant 6 : index
    %c0_41 = arith.constant 0 : index
    %c0_42 = arith.constant 0 : index
    %58 = vector.load %arg3[%c6_40, %c0_41, %c0_42] : memref<9x8x4xf32, #tpu.memory_space<vmem>>, vector<1x8x4xf32>
    %59 = vector.shape_cast %58 : vector<1x8x4xf32> to vector<8x4xf32>
    %cst_43 = arith.constant dense<0.000000e+00> : vector<8x256xf32>
    %60 = tpu.matmul %59, %57, %cst_43 {dimension_numbers = #tpu.dot_dimension_numbers<[1], [0], [0], [1], [0, 0, 1, 1], [], []>} : vector<8x4xf32>, vector<4x256xf32>, vector<8x256xf32> -> vector<8x256xf32>
    %61 = arith.addf %52, %60 : vector<8x256xf32>
    %c240_i32 = arith.constant 240 : i32
    %62 = tpu.dynamic_rotate %1 by %c240_i32 dim 1 : vector<4x256xf32>, i32 -> vector<4x256xf32>
    %c7 = arith.constant 7 : index
    %c0_44 = arith.constant 0 : index
    %c0_45 = arith.constant 0 : index
    %63 = vector.load %arg2[%c7, %c0_44, %c0_45] : memref<9x1x256xf32, #tpu.memory_space<vmem>>, vector<1x1x256xf32>
    %64 = vector.shape_cast %63 : vector<1x1x256xf32> to vector<1x256xf32>
    %65 = vector.broadcast %64 : vector<1x256xf32> to vector<4x256xf32>
    %66 = arith.mulf %62, %65 : vector<4x256xf32>
    %c7_46 = arith.constant 7 : index
    %c0_47 = arith.constant 0 : index
    %c0_48 = arith.constant 0 : index
    %67 = vector.load %arg3[%c7_46, %c0_47, %c0_48] : memref<9x8x4xf32, #tpu.memory_space<vmem>>, vector<1x8x4xf32>
    %68 = vector.shape_cast %67 : vector<1x8x4xf32> to vector<8x4xf32>
    %cst_49 = arith.constant dense<0.000000e+00> : vector<8x256xf32>
    %69 = tpu.matmul %68, %66, %cst_49 {dimension_numbers = #tpu.dot_dimension_numbers<[1], [0], [0], [1], [0, 0, 1, 1], [], []>} : vector<8x4xf32>, vector<4x256xf32>, vector<8x256xf32> -> vector<8x256xf32>
    %70 = arith.addf %61, %69 : vector<8x256xf32>
    %c239_i32 = arith.constant 239 : i32
    %71 = tpu.dynamic_rotate %1 by %c239_i32 dim 1 : vector<4x256xf32>, i32 -> vector<4x256xf32>
    %c8 = arith.constant 8 : index
    %c0_50 = arith.constant 0 : index
    %c0_51 = arith.constant 0 : index
    %72 = vector.load %arg2[%c8, %c0_50, %c0_51] : memref<9x1x256xf32, #tpu.memory_space<vmem>>, vector<1x1x256xf32>
    %73 = vector.shape_cast %72 : vector<1x1x256xf32> to vector<1x256xf32>
    %74 = vector.broadcast %73 : vector<1x256xf32> to vector<4x256xf32>
    %75 = arith.mulf %71, %74 : vector<4x256xf32>
    %c8_52 = arith.constant 8 : index
    %c0_53 = arith.constant 0 : index
    %c0_54 = arith.constant 0 : index
    %76 = vector.load %arg3[%c8_52, %c0_53, %c0_54] : memref<9x8x4xf32, #tpu.memory_space<vmem>>, vector<1x8x4xf32>
    %77 = vector.shape_cast %76 : vector<1x8x4xf32> to vector<8x4xf32>
    %cst_55 = arith.constant dense<0.000000e+00> : vector<8x256xf32>
    %78 = tpu.matmul %77, %75, %cst_55 {dimension_numbers = #tpu.dot_dimension_numbers<[1], [0], [0], [1], [0, 0, 1, 1], [], []>} : vector<8x4xf32>, vector<4x256xf32>, vector<8x256xf32> -> vector<8x256xf32>
    %79 = arith.addf %70, %78 : vector<8x256xf32>
    %80 = vector.broadcast %2 : vector<8x1xf32> to vector<8x256xf32>
    %81 = arith.addf %79, %80 : vector<8x256xf32>
    %cst_56 = arith.constant dense<0.000000e+00> : vector<8xf32>
    %82 = vector.multi_reduction <add>, %81, %cst_56 [1] : vector<8x256xf32> to vector<8xf32>
    %83 = vector.shape_cast %82 : vector<8xf32> to vector<8x1xf32>
    %cst_57 = arith.constant 2.560000e+02 : f32
    %84 = vector.broadcast %cst_57 : f32 to vector<8x1xf32>
    %85 = arith.divf %83, %84 : vector<8x1xf32>
    %86 = arith.mulf %81, %81 : vector<8x256xf32>
    %cst_58 = arith.constant dense<0.000000e+00> : vector<8xf32>
    %87 = vector.multi_reduction <add>, %86, %cst_58 [1] : vector<8x256xf32> to vector<8xf32>
    %88 = vector.shape_cast %87 : vector<8xf32> to vector<8x1xf32>
    %cst_59 = arith.constant 2.560000e+02 : f32
    %89 = vector.broadcast %cst_59 : f32 to vector<8x1xf32>
    %90 = arith.divf %88, %89 : vector<8x1xf32>
    %91 = arith.mulf %85, %85 : vector<8x1xf32>
    %92 = arith.subf %90, %91 : vector<8x1xf32>
    %cst_60 = arith.constant 0.000000e+00 : f32
    %93 = vector.broadcast %cst_60 : f32 to vector<8x1xf32>
    %94 = arith.maximumf %92, %93 : vector<8x1xf32>
    %95 = vector.broadcast %85 : vector<8x1xf32> to vector<8x256xf32>
    %96 = arith.subf %81, %95 : vector<8x256xf32>
    %cst_61 = arith.constant 9.99999974E-6 : f32
    %97 = vector.broadcast %cst_61 : f32 to vector<8x1xf32>
    %98 = arith.addf %94, %97 : vector<8x1xf32>
    %99 = math.rsqrt %98 : vector<8x1xf32>
    %100 = vector.broadcast %99 : vector<8x1xf32> to vector<8x256xf32>
    %101 = arith.mulf %96, %100 : vector<8x256xf32>
    %cst_62 = arith.constant 0.000000e+00 : f32
    %102 = vector.broadcast %cst_62 : f32 to vector<8x256xf32>
    %103 = arith.cmpf oge, %101, %102 : vector<8x256xf32>
    %cst_63 = arith.constant 2.000000e-01 : f32
    %104 = vector.broadcast %cst_63 : f32 to vector<8x256xf32>
    %105 = arith.mulf %104, %101 : vector<8x256xf32>
    %106 = arith.select %103, %101, %105 : vector<8x256xi1>, vector<8x256xf32>
    %c0_64 = arith.constant 0 : index
    %c0_65 = arith.constant 0 : index
    %107 = vector.load %arg6[%c0_64, %c0_65] : memref<16x1xf32, #tpu.memory_space<vmem>>, vector<16x1xf32>
    %cst_66 = arith.constant 0.000000e+00 : f32
    %108 = vector.broadcast %cst_66 : f32 to vector<16x256xf32>
    %c17_i32_67 = arith.constant 17 : i32
    %109 = tpu.dynamic_rotate %106 by %c17_i32_67 dim 1 : vector<8x256xf32>, i32 -> vector<8x256xf32>
    %c0_68 = arith.constant 0 : index
    %c0_69 = arith.constant 0 : index
    %c0_70 = arith.constant 0 : index
    %110 = vector.load %arg2[%c0_68, %c0_69, %c0_70] : memref<9x1x256xf32, #tpu.memory_space<vmem>>, vector<1x1x256xf32>
    %111 = vector.shape_cast %110 : vector<1x1x256xf32> to vector<1x256xf32>
    %112 = vector.broadcast %111 : vector<1x256xf32> to vector<8x256xf32>
    %113 = arith.mulf %109, %112 : vector<8x256xf32>
    %c0_71 = arith.constant 0 : index
    %c0_72 = arith.constant 0 : index
    %c0_73 = arith.constant 0 : index
    %114 = vector.load %arg5[%c0_71, %c0_72, %c0_73] : memref<9x16x8xf32, #tpu.memory_space<vmem>>, vector<1x16x8xf32>
    %115 = vector.shape_cast %114 : vector<1x16x8xf32> to vector<16x8xf32>
    %cst_74 = arith.constant dense<0.000000e+00> : vector<16x256xf32>
    %116 = tpu.matmul %115, %113, %cst_74 {dimension_numbers = #tpu.dot_dimension_numbers<[1], [0], [0], [1], [0, 0, 1, 1], [], []>} : vector<16x8xf32>, vector<8x256xf32>, vector<16x256xf32> -> vector<16x256xf32>
    %117 = arith.addf %108, %116 : vector<16x256xf32>
    %c16_i32_75 = arith.constant 16 : i32
    %118 = tpu.dynamic_rotate %106 by %c16_i32_75 dim 1 : vector<8x256xf32>, i32 -> vector<8x256xf32>
    %c1_76 = arith.constant 1 : index
    %c0_77 = arith.constant 0 : index
    %c0_78 = arith.constant 0 : index
    %119 = vector.load %arg2[%c1_76, %c0_77, %c0_78] : memref<9x1x256xf32, #tpu.memory_space<vmem>>, vector<1x1x256xf32>
    %120 = vector.shape_cast %119 : vector<1x1x256xf32> to vector<1x256xf32>
    %121 = vector.broadcast %120 : vector<1x256xf32> to vector<8x256xf32>
    %122 = arith.mulf %118, %121 : vector<8x256xf32>
    %c1_79 = arith.constant 1 : index
    %c0_80 = arith.constant 0 : index
    %c0_81 = arith.constant 0 : index
    %123 = vector.load %arg5[%c1_79, %c0_80, %c0_81] : memref<9x16x8xf32, #tpu.memory_space<vmem>>, vector<1x16x8xf32>
    %124 = vector.shape_cast %123 : vector<1x16x8xf32> to vector<16x8xf32>
    %cst_82 = arith.constant dense<0.000000e+00> : vector<16x256xf32>
    %125 = tpu.matmul %124, %122, %cst_82 {dimension_numbers = #tpu.dot_dimension_numbers<[1], [0], [0], [1], [0, 0, 1, 1], [], []>} : vector<16x8xf32>, vector<8x256xf32>, vector<16x256xf32> -> vector<16x256xf32>
    %126 = arith.addf %117, %125 : vector<16x256xf32>
    %c15_i32_83 = arith.constant 15 : i32
    %127 = tpu.dynamic_rotate %106 by %c15_i32_83 dim 1 : vector<8x256xf32>, i32 -> vector<8x256xf32>
    %c2_84 = arith.constant 2 : index
    %c0_85 = arith.constant 0 : index
    %c0_86 = arith.constant 0 : index
    %128 = vector.load %arg2[%c2_84, %c0_85, %c0_86] : memref<9x1x256xf32, #tpu.memory_space<vmem>>, vector<1x1x256xf32>
    %129 = vector.shape_cast %128 : vector<1x1x256xf32> to vector<1x256xf32>
    %130 = vector.broadcast %129 : vector<1x256xf32> to vector<8x256xf32>
    %131 = arith.mulf %127, %130 : vector<8x256xf32>
    %c2_87 = arith.constant 2 : index
    %c0_88 = arith.constant 0 : index
    %c0_89 = arith.constant 0 : index
    %132 = vector.load %arg5[%c2_87, %c0_88, %c0_89] : memref<9x16x8xf32, #tpu.memory_space<vmem>>, vector<1x16x8xf32>
    %133 = vector.shape_cast %132 : vector<1x16x8xf32> to vector<16x8xf32>
    %cst_90 = arith.constant dense<0.000000e+00> : vector<16x256xf32>
    %134 = tpu.matmul %133, %131, %cst_90 {dimension_numbers = #tpu.dot_dimension_numbers<[1], [0], [0], [1], [0, 0, 1, 1], [], []>} : vector<16x8xf32>, vector<8x256xf32>, vector<16x256xf32> -> vector<16x256xf32>
    %135 = arith.addf %126, %134 : vector<16x256xf32>
    %c1_i32_91 = arith.constant 1 : i32
    %136 = tpu.dynamic_rotate %106 by %c1_i32_91 dim 1 : vector<8x256xf32>, i32 -> vector<8x256xf32>
    %c3_92 = arith.constant 3 : index
    %c0_93 = arith.constant 0 : index
    %c0_94 = arith.constant 0 : index
    %137 = vector.load %arg2[%c3_92, %c0_93, %c0_94] : memref<9x1x256xf32, #tpu.memory_space<vmem>>, vector<1x1x256xf32>
    %138 = vector.shape_cast %137 : vector<1x1x256xf32> to vector<1x256xf32>
    %139 = vector.broadcast %138 : vector<1x256xf32> to vector<8x256xf32>
    %140 = arith.mulf %136, %139 : vector<8x256xf32>
    %c3_95 = arith.constant 3 : index
    %c0_96 = arith.constant 0 : index
    %c0_97 = arith.constant 0 : index
    %141 = vector.load %arg5[%c3_95, %c0_96, %c0_97] : memref<9x16x8xf32, #tpu.memory_space<vmem>>, vector<1x16x8xf32>
    %142 = vector.shape_cast %141 : vector<1x16x8xf32> to vector<16x8xf32>
    %cst_98 = arith.constant dense<0.000000e+00> : vector<16x256xf32>
    %143 = tpu.matmul %142, %140, %cst_98 {dimension_numbers = #tpu.dot_dimension_numbers<[1], [0], [0], [1], [0, 0, 1, 1], [], []>} : vector<16x8xf32>, vector<8x256xf32>, vector<16x256xf32> -> vector<16x256xf32>
    %144 = arith.addf %135, %143 : vector<16x256xf32>
    %c4_99 = arith.constant 4 : index
    %c0_100 = arith.constant 0 : index
    %c0_101 = arith.constant 0 : index
    %145 = vector.load %arg5[%c4_99, %c0_100, %c0_101] : memref<9x16x8xf32, #tpu.memory_space<vmem>>, vector<1x16x8xf32>
    %146 = vector.shape_cast %145 : vector<1x16x8xf32> to vector<16x8xf32>
    %cst_102 = arith.constant dense<0.000000e+00> : vector<16x256xf32>
    %147 = tpu.matmul %146, %106, %cst_102 {dimension_numbers = #tpu.dot_dimension_numbers<[1], [0], [0], [1], [0, 0, 1, 1], [], []>} : vector<16x8xf32>, vector<8x256xf32>, vector<16x256xf32> -> vector<16x256xf32>
    %148 = arith.addf %144, %147 : vector<16x256xf32>
    %c255_i32_103 = arith.constant 255 : i32
    %149 = tpu.dynamic_rotate %106 by %c255_i32_103 dim 1 : vector<8x256xf32>, i32 -> vector<8x256xf32>
    %c5_104 = arith.constant 5 : index
    %c0_105 = arith.constant 0 : index
    %c0_106 = arith.constant 0 : index
    %150 = vector.load %arg2[%c5_104, %c0_105, %c0_106] : memref<9x1x256xf32, #tpu.memory_space<vmem>>, vector<1x1x256xf32>
    %151 = vector.shape_cast %150 : vector<1x1x256xf32> to vector<1x256xf32>
    %152 = vector.broadcast %151 : vector<1x256xf32> to vector<8x256xf32>
    %153 = arith.mulf %149, %152 : vector<8x256xf32>
    %c5_107 = arith.constant 5 : index
    %c0_108 = arith.constant 0 : index
    %c0_109 = arith.constant 0 : index
    %154 = vector.load %arg5[%c5_107, %c0_108, %c0_109] : memref<9x16x8xf32, #tpu.memory_space<vmem>>, vector<1x16x8xf32>
    %155 = vector.shape_cast %154 : vector<1x16x8xf32> to vector<16x8xf32>
    %cst_110 = arith.constant dense<0.000000e+00> : vector<16x256xf32>
    %156 = tpu.matmul %155, %153, %cst_110 {dimension_numbers = #tpu.dot_dimension_numbers<[1], [0], [0], [1], [0, 0, 1, 1], [], []>} : vector<16x8xf32>, vector<8x256xf32>, vector<16x256xf32> -> vector<16x256xf32>
    %157 = arith.addf %148, %156 : vector<16x256xf32>
    %c241_i32_111 = arith.constant 241 : i32
    %158 = tpu.dynamic_rotate %106 by %c241_i32_111 dim 1 : vector<8x256xf32>, i32 -> vector<8x256xf32>
    %c6_112 = arith.constant 6 : index
    %c0_113 = arith.constant 0 : index
    %c0_114 = arith.constant 0 : index
    %159 = vector.load %arg2[%c6_112, %c0_113, %c0_114] : memref<9x1x256xf32, #tpu.memory_space<vmem>>, vector<1x1x256xf32>
    %160 = vector.shape_cast %159 : vector<1x1x256xf32> to vector<1x256xf32>
    %161 = vector.broadcast %160 : vector<1x256xf32> to vector<8x256xf32>
    %162 = arith.mulf %158, %161 : vector<8x256xf32>
    %c6_115 = arith.constant 6 : index
    %c0_116 = arith.constant 0 : index
    %c0_117 = arith.constant 0 : index
    %163 = vector.load %arg5[%c6_115, %c0_116, %c0_117] : memref<9x16x8xf32, #tpu.memory_space<vmem>>, vector<1x16x8xf32>
    %164 = vector.shape_cast %163 : vector<1x16x8xf32> to vector<16x8xf32>
    %cst_118 = arith.constant dense<0.000000e+00> : vector<16x256xf32>
    %165 = tpu.matmul %164, %162, %cst_118 {dimension_numbers = #tpu.dot_dimension_numbers<[1], [0], [0], [1], [0, 0, 1, 1], [], []>} : vector<16x8xf32>, vector<8x256xf32>, vector<16x256xf32> -> vector<16x256xf32>
    %166 = arith.addf %157, %165 : vector<16x256xf32>
    %c240_i32_119 = arith.constant 240 : i32
    %167 = tpu.dynamic_rotate %106 by %c240_i32_119 dim 1 : vector<8x256xf32>, i32 -> vector<8x256xf32>
    %c7_120 = arith.constant 7 : index
    %c0_121 = arith.constant 0 : index
    %c0_122 = arith.constant 0 : index
    %168 = vector.load %arg2[%c7_120, %c0_121, %c0_122] : memref<9x1x256xf32, #tpu.memory_space<vmem>>, vector<1x1x256xf32>
    %169 = vector.shape_cast %168 : vector<1x1x256xf32> to vector<1x256xf32>
    %170 = vector.broadcast %169 : vector<1x256xf32> to vector<8x256xf32>
    %171 = arith.mulf %167, %170 : vector<8x256xf32>
    %c7_123 = arith.constant 7 : index
    %c0_124 = arith.constant 0 : index
    %c0_125 = arith.constant 0 : index
    %172 = vector.load %arg5[%c7_123, %c0_124, %c0_125] : memref<9x16x8xf32, #tpu.memory_space<vmem>>, vector<1x16x8xf32>
    %173 = vector.shape_cast %172 : vector<1x16x8xf32> to vector<16x8xf32>
    %cst_126 = arith.constant dense<0.000000e+00> : vector<16x256xf32>
    %174 = tpu.matmul %173, %171, %cst_126 {dimension_numbers = #tpu.dot_dimension_numbers<[1], [0], [0], [1], [0, 0, 1, 1], [], []>} : vector<16x8xf32>, vector<8x256xf32>, vector<16x256xf32> -> vector<16x256xf32>
    %175 = arith.addf %166, %174 : vector<16x256xf32>
    %c239_i32_127 = arith.constant 239 : i32
    %176 = tpu.dynamic_rotate %106 by %c239_i32_127 dim 1 : vector<8x256xf32>, i32 -> vector<8x256xf32>
    %c8_128 = arith.constant 8 : index
    %c0_129 = arith.constant 0 : index
    %c0_130 = arith.constant 0 : index
    %177 = vector.load %arg2[%c8_128, %c0_129, %c0_130] : memref<9x1x256xf32, #tpu.memory_space<vmem>>, vector<1x1x256xf32>
    %178 = vector.shape_cast %177 : vector<1x1x256xf32> to vector<1x256xf32>
    %179 = vector.broadcast %178 : vector<1x256xf32> to vector<8x256xf32>
    %180 = arith.mulf %176, %179 : vector<8x256xf32>
    %c8_131 = arith.constant 8 : index
    %c0_132 = arith.constant 0 : index
    %c0_133 = arith.constant 0 : index
    %181 = vector.load %arg5[%c8_131, %c0_132, %c0_133] : memref<9x16x8xf32, #tpu.memory_space<vmem>>, vector<1x16x8xf32>
    %182 = vector.shape_cast %181 : vector<1x16x8xf32> to vector<16x8xf32>
    %cst_134 = arith.constant dense<0.000000e+00> : vector<16x256xf32>
    %183 = tpu.matmul %182, %180, %cst_134 {dimension_numbers = #tpu.dot_dimension_numbers<[1], [0], [0], [1], [0, 0, 1, 1], [], []>} : vector<16x8xf32>, vector<8x256xf32>, vector<16x256xf32> -> vector<16x256xf32>
    %184 = arith.addf %175, %183 : vector<16x256xf32>
    %185 = vector.broadcast %107 : vector<16x1xf32> to vector<16x256xf32>
    %186 = arith.addf %184, %185 : vector<16x256xf32>
    %cst_135 = arith.constant dense<0.000000e+00> : vector<16xf32>
    %187 = vector.multi_reduction <add>, %186, %cst_135 [1] : vector<16x256xf32> to vector<16xf32>
    %188 = vector.shape_cast %187 : vector<16xf32> to vector<16x1xf32>
    %cst_136 = arith.constant 2.560000e+02 : f32
    %189 = vector.broadcast %cst_136 : f32 to vector<16x1xf32>
    %190 = arith.divf %188, %189 : vector<16x1xf32>
    %191 = arith.mulf %186, %186 : vector<16x256xf32>
    %cst_137 = arith.constant dense<0.000000e+00> : vector<16xf32>
    %192 = vector.multi_reduction <add>, %191, %cst_137 [1] : vector<16x256xf32> to vector<16xf32>
    %193 = vector.shape_cast %192 : vector<16xf32> to vector<16x1xf32>
    %cst_138 = arith.constant 2.560000e+02 : f32
    %194 = vector.broadcast %cst_138 : f32 to vector<16x1xf32>
    %195 = arith.divf %193, %194 : vector<16x1xf32>
    %196 = arith.mulf %190, %190 : vector<16x1xf32>
    %197 = arith.subf %195, %196 : vector<16x1xf32>
    %cst_139 = arith.constant 0.000000e+00 : f32
    %198 = vector.broadcast %cst_139 : f32 to vector<16x1xf32>
    %199 = arith.maximumf %197, %198 : vector<16x1xf32>
    %200 = vector.broadcast %190 : vector<16x1xf32> to vector<16x256xf32>
    %201 = arith.subf %186, %200 : vector<16x256xf32>
    %cst_140 = arith.constant 9.99999974E-6 : f32
    %202 = vector.broadcast %cst_140 : f32 to vector<16x1xf32>
    %203 = arith.addf %199, %202 : vector<16x1xf32>
    %204 = math.rsqrt %203 : vector<16x1xf32>
    %205 = vector.broadcast %204 : vector<16x1xf32> to vector<16x256xf32>
    %206 = arith.mulf %201, %205 : vector<16x256xf32>
    %cst_141 = arith.constant 0.000000e+00 : f32
    %207 = vector.broadcast %cst_141 : f32 to vector<16x256xf32>
    %208 = arith.cmpf oge, %206, %207 : vector<16x256xf32>
    %cst_142 = arith.constant 2.000000e-01 : f32
    %209 = vector.broadcast %cst_142 : f32 to vector<16x256xf32>
    %210 = arith.mulf %209, %206 : vector<16x256xf32>
    %211 = arith.select %208, %206, %210 : vector<16x256xi1>, vector<16x256xf32>
    %c0_143 = arith.constant 0 : index
    %c0_144 = arith.constant 0 : index
    %212 = vector.load %arg7[%c0_143, %c0_144] : memref<16x1xf32, #tpu.memory_space<vmem>>, vector<16x1xf32>
    %213 = vector.broadcast %212 : vector<16x1xf32> to vector<16x256xf32>
    %214 = arith.mulf %211, %213 : vector<16x256xf32>
    %cst_145 = arith.constant dense<0.000000e+00> : vector<256xf32>
    %215 = vector.multi_reduction <add>, %214, %cst_145 [0] : vector<16x256xf32> to vector<256xf32>
    %216 = vector.shape_cast %215 : vector<256xf32> to vector<1x256xf32>
    %c0_146 = arith.constant 0 : index
    %c0_147 = arith.constant 0 : index
    %217 = vector.load %arg8[%c0_146, %c0_147] : memref<1x1xf32, #tpu.memory_space<vmem>>, vector<1x1xf32>
    %218 = vector.broadcast %217 : vector<1x1xf32> to vector<1x256xf32>
    %219 = arith.addf %216, %218 : vector<1x256xf32>
    %c0_148 = arith.constant 0 : index
    %c0_149 = arith.constant 0 : index
    %c0_150 = arith.constant 0 : index
    %220 = vector.load %arg9[%c0_148, %c0_149, %c0_150] : memref<1x1x256xf32, #tpu.memory_space<vmem>>, vector<1x1x256xf32>
    %221 = vector.shape_cast %220 : vector<1x1x256xf32> to vector<1x256xf32>
    %222 = vector.shape_cast %219 : vector<1x256xf32> to vector<1x1x256xf32>
    tpu.vector_store %arg9[%c0_148, %c0_149, %c0_150], %222 {strides = array<i32>} : memref<1x1x256xf32, #tpu.memory_space<vmem>>, vector<1x1x256xf32>,
    %223 = arith.negf %219 : vector<1x256xf32>
    %224 = math.exp %223 : vector<1x256xf32>
    %cst_151 = arith.constant 1.000000e+00 : f32
    %225 = vector.broadcast %cst_151 : f32 to vector<1x256xf32>
    %226 = arith.addf %225, %224 : vector<1x256xf32>
    %227 = arith.divf %225, %226 : vector<1x256xf32>
    %c0_152 = arith.constant 0 : index
    %c0_153 = arith.constant 0 : index
    %c0_154 = arith.constant 0 : index
    %228 = vector.load %arg10[%c0_152, %c0_153, %c0_154] : memref<1x1x256xf32, #tpu.memory_space<vmem>>, vector<1x1x256xf32>
    %229 = vector.shape_cast %228 : vector<1x1x256xf32> to vector<1x256xf32>
    %230 = vector.shape_cast %227 : vector<1x256xf32> to vector<1x1x256xf32>
    tpu.vector_store %arg10[%c0_152, %c0_153, %c0_154], %230 {strides = array<i32>} : memref<1x1x256xf32, #tpu.memory_space<vmem>>, vector<1x1x256xf32>,
    return
  }
  func.func @transform_0(%arg0: i32) -> (i32, i32, i32) {
    %c0_i32 = arith.constant 0 : i32
    %c0_i32_0 = arith.constant 0 : i32
    %c0_i32_1 = arith.constant 0 : i32
    return %arg0, %c0_i32, %c0_i32_0 : i32, i32, i32
  }
  func.func @transform_1(%arg0: i32) -> (i32, i32, i32) {
    %c0_i32 = arith.constant 0 : i32
    %c0_i32_0 = arith.constant 0 : i32
    %c0_i32_1 = arith.constant 0 : i32
    %c0_i32_2 = arith.constant 0 : i32
    return %c0_i32, %c0_i32_0, %c0_i32_1 : i32, i32, i32
  }
  func.func @transform_2(%arg0: i32) -> (i32, i32, i32) {
    %c0_i32 = arith.constant 0 : i32
    %c0_i32_0 = arith.constant 0 : i32
    %c0_i32_1 = arith.constant 0 : i32
    %c0_i32_2 = arith.constant 0 : i32
    return %c0_i32, %c0_i32_0, %c0_i32_1 : i32, i32, i32
  }
  func.func @transform_3(%arg0: i32) -> (i32, i32) {
    %c0_i32 = arith.constant 0 : i32
    %c0_i32_0 = arith.constant 0 : i32
    %c0_i32_1 = arith.constant 0 : i32
    return %c0_i32, %c0_i32_0 : i32, i32
  }
  func.func @transform_4(%arg0: i32) -> (i32, i32, i32) {
    %c0_i32 = arith.constant 0 : i32
    %c0_i32_0 = arith.constant 0 : i32
    %c0_i32_1 = arith.constant 0 : i32
    %c0_i32_2 = arith.constant 0 : i32
    return %c0_i32, %c0_i32_0, %c0_i32_1 : i32, i32, i32
  }
  func.func @transform_5(%arg0: i32) -> (i32, i32) {
    %c0_i32 = arith.constant 0 : i32
    %c0_i32_0 = arith.constant 0 : i32
    %c0_i32_1 = arith.constant 0 : i32
    return %c0_i32, %c0_i32_0 : i32, i32
  }
  func.func @transform_6(%arg0: i32) -> (i32, i32) {
    %c0_i32 = arith.constant 0 : i32
    %c0_i32_0 = arith.constant 0 : i32
    %c0_i32_1 = arith.constant 0 : i32
    return %c0_i32, %c0_i32_0 : i32, i32
  }
  func.func @transform_7(%arg0: i32) -> (i32, i32) {
    %c0_i32 = arith.constant 0 : i32
    %c0_i32_0 = arith.constant 0 : i32
    %c0_i32_1 = arith.constant 0 : i32
    return %c0_i32, %c0_i32_0 : i32, i32
  }
  func.func @transform_8(%arg0: i32) -> (i32, i32, i32) {
    %c0_i32 = arith.constant 0 : i32
    %c0_i32_0 = arith.constant 0 : i32
    %c0_i32_1 = arith.constant 0 : i32
    return %arg0, %c0_i32, %c0_i32_0 : i32, i32, i32
  }
  func.func @transform_9(%arg0: i32) -> (i32, i32, i32) {
    %c0_i32 = arith.constant 0 : i32
    %c0_i32_0 = arith.constant 0 : i32
    %c0_i32_1 = arith.constant 0 : i32
    return %arg0, %c0_i32, %c0_i32_0 : i32, i32, i32
  }
}

</mosaic_0001>

<bundles_post_ra>
// kernel: cnn_discriminator_forward.1
= control target key start
LH: loop header
LB: loop body
LE: loop exit
PB: predicated region body
PF: predicated region fallthrough
CT: control target
= control target key end

     0   :  { %s3196_s0 = inlined_call_operand.vmem [shape: f32[2,4,256], index: 0, kind: input, shape index: {}]   ;;  %s3197_s1 = inlined_call_operand.vmem [shape: f32[9,1,256], index: 1, kind: input, shape index: {}]   ;;  %s3198_s2 = inlined_call_operand.hbm [shape: f32[9,8,4], index: 2, kind: input, shape index: {}]   ;;  %s3199_s3 = inlined_call_operand.vmem [shape: f32[8,1], index: 3, kind: input, shape index: {}]   ;;  %s3200_s4 = inlined_call_operand.vmem [shape: f32[9,16,8], index: 4, kind: input, shape index: {}]   ;;  %s3201_s5 = inlined_call_operand.vmem [shape: f32[16,1], index: 5, kind: input, shape index: {}]   ;;  %s3202_s6 = inlined_call_operand.vmem [shape: f32[16,1], index: 6, kind: input, shape index: {}]   ;;  %s3203_s7 = inlined_call_operand.<no memory space> [shape: f32[1,1], index: 7, kind: input, shape index: {}]   ;;  %s3204_s8 = inlined_call_operand.vmem [shape: f32[2,1,256], index: 8, kind: output, shape index: {0}]   ;;  %s3205_s9 = inlined_call_operand.vmem [shape: f32[2,1,256], index: 9, kind: output, shape index: {1}]  }
   0x1   :  { %v15_v0 = vstv %s3203_s7 }
   0x2   :  { %16 = vst [vmem:[#allocation2] sm:$0x1] %v15_v0 }
   0x3   :  { %17 = vsyncpa [#allocation4], 0  ;;  %s2737_s11 = smov 0  }
   0x4 LB: > { %s2743_s12 = sadd.s32 4294967295, %s2668_s11   ;;  %p2451_p0 = scmp.ge.s32.totalorder %s2668_s11, 1  ;;  %s2668_s11 = sphi %s2737_s11, %s23_s11  }
   0x5   : > { %p253_p1 = scmp.lt.s32.totalorder %s2668_s11, 3  ;;  %s2670_s13 = smov [#allocation3]  }
   0x6   : > { %s268_s7 = sshll.u32 %s2670_s13, 4  ;;  %p3206_p3 = scmp.eq.s32.totalorder %s2743_s12, 0  ;;  %s269_s7 = int_to_ptr.vmem [resolvable:$true] %s268_s7 }
   0x7   : > { %p2747_p2 = pnand %p2451_p0, %p253_p1  ;;  %s2630_s18 = scalar_lea.hbm %s3198_s2, 1152 }
   0x8   : > { %p2631_p6 = scmp.ne.s32.totalorder %s3198_s2, %s2630_s18  ;;  %p2637_p10 = scmp.lt.u32.totalorder %s2630_s18, %s3198_s2 }
   0x9   : > { %s3208_s14 = scalar_select %p2747_p2, 1, 0 }
   0xa   : > { %p2585_p4 = pneg %p2747_p2 }
   0xc   : > { %p2756_p5 = pnand %p3206_p3, %p2585_p4 }
   0xe   : > { %p2632_p7 = pneg %p2756_p5 }
  0x10   : > { %p2633_p8 = pnand %p2632_p7, %p2631_p6 }
  0x12   : > { %p2634_p9 = pneg %p2633_p8 }
  0x14   : > { %p2639_p11 = pnand %p2637_p10, %p2634_p9 }
  0x16   : > { %2642 = shalt.err (!%p2639_p11)
}
  0x17   : > { %s2643_s23 = scalar_lea.vmem %s269_s7, 1152  ;;  %p2651_p1 = scmp.lt.s32.totalorder %s269_s7, %s269_s7 }
  0x18   : > { %p2644_p12 = scmp.ne.s32.totalorder %s269_s7, %s2643_s23  ;;  %p2652_p4 = scmp.lt.s32.totalorder %s2643_s23, %s2643_s23 }
  0x1a   : > { %p2646_p13 = pnand %p2644_p12, %p2632_p7  ;;  %p2653_p3 = por %p2652_p4, %p2651_p1 }
  0x1c   : > { %p2647_p0 = pneg %p2646_p13 }
  0x1e   : > { %p2654_p2 = pnand %p2653_p3, %p2647_p0 }
  0x20   : > { %2657 = shalt.err (!%p2654_p2)
}
  0x21   : > { %s2671_s24 = smov 128   ;;  %s2672_s25 = smov 8  }
  0x22   : > { %2588 = dma.hbm_to_vmem [thread:$0]  (!%p2756_p5), %s3198_s2, 1152, %s269_s7, [#allocation4], %s2671_s24, %s2671_s24, %s2672_s25  }
  0x23   : > { %p3210_p6 = scmp.ne.s32.totalorder %s3208_s14, 0 }
  0x24   : > { %p3211_p8 = scmp.eq.s32.totalorder (!%p3210_p6), %s2743_s12, 0 }
  0x25   : > { %307 = sbr.rel (%p3210_p6) target bundleno = 1237 (0x4d5), region = 52 }
  0x2c   : > { %2663 = dma.done.wait (%p3211_p8), [#allocation4], 1152   ;;  %p3212_p7 = pmov %p3211_p8 }
  0x2d   : > { %p346_p2 = scmp.lt.s32.totalorder %s2743_s12, 1  ;;  %v2673_v1 = vmov 0.0   ;;  %s2674_s13 = smov 16   ;;  %v360_v4 = vld [vmem:[%s3199_s3] sm:$0xff]  ;;  %v2682_v5 = vmov 0   ;;  %v368_v6 = vlaneseq  ;;  %vm416_vm2 = vcmask 1043456  }
  0x2e   : > { %2665 = vsyncadd (%p3212_p7), [#allocation4], 4294966144  ;;  %487 = vmatprep.mubr.f32.mxu0 %v2673_v1  ;;  %1596 = vmatprep.mubr.f32.mxu1 %v2673_v1  ;;  %s2675_s7 = smov 17   ;;  %s2676_s14 = smov 15   ;;  %v2460_v11 = vld [vmem:[%s3197_s1 + $0x2] sm:$0x3] }
  0x2f   : > { %s3216_s12 = smov (!%p346_p2, %s2743_s12), 1  ;;  %s2677_s15 = smov 1   ;;  %2613 = vset.pattern.permute.xlu0 %v2682_v5  ;;  %2614 = vset.pattern.permute.xlu1 %v2682_v5  ;;  %v2834_v7 = vshrl.u32 %v368_v6, 7  ;;  %v2837_v8 = vand.u32 127, %v368_v6  ;;  %v373_v12 = vld [vmem:[%s3197_s1] sm:$0x3] }
  0x30   : > { %s2532_s28 = sshll.u32 %s3216_s12, 3  ;;  %s2678_s16 = smov 127   ;;  %v2467_v19 = vld [vmem:[%s3197_s1 + $0x4] sm:$0x3]  ;;  %v411_v31 = vld [vmem:[#allocation3 + $0x8] sm:$0xff]  ;;  %vm412_vm4 = vcmask 31744  }
  0x31   : > { %s350_s10 = scalar_lea.vmem %s3196_s0, %s2532_s28  ;;  %s2679_s17 = smov 113   ;;  %v2840_v9 = vsub.s32 0, %v2834_v7  ;;  %v2843_v10 = vsub.s32 1, %v2834_v7  ;;  %vm392_vm0 = vcmp.lt.s32.totalorder %v2837_v8, 16  ;;  %vm370_vm1 = vcmp.lt.s32.totalorder %v2837_v8, 17  ;;  %v387_v43 = vld [vmem:[#allocation3] sm:$0xff] }
  0x32   : > { %v2792_v2 = vld [vmem:[%s350_s10] sm:$0xff]  ;;  %s2680_s18 = smov 112   ;;  %s2681_s19 = smov 111   ;;  %vm578_vm3 = vcmp.lt.s32.totalorder %v2837_v8, 15  ;;  %vm684_vm5 = vcmp.lt.s32.totalorder %v2837_v8, 1  ;;  %v597_v48 = vld [vmem:[#allocation3 + $0x10] sm:$0xff] }
  0x33   : > { %388 = vrot.lane.b32.xlu0 %v2792_v2, %s2674_s13  ;;  %364 = vrot.lane.b32.xlu1 %v2792_v2, %s2675_s7  ;;  %v2800_v3 = vcombine.high %v2792_v2, %v2792_v2  ;;  %v2853_v15 = vrot.slane %v2460_v11, %v2840_v9  ;;  %v2857_v16 = vrot.slane %v373_v12, %v2843_v10  ;;  %v2471_v35 = vld [vmem:[%s3197_s1 + $0x6] sm:$0x3]  ;;  %v2478_v50 = vld [vmem:[%s3197_s1 + $0xa] sm:$0x3]  ;;  %vm872_vm6 = vcmp.lt.s32.totalorder %v2837_v8, 127  ;;  %v703_v55 = vld [vmem:[#allocation3 + $0x18] sm:$0xff] }
  0x34   : > { %v2860_v17 = vrot.slane %v2460_v11, %v2843_v10  ;;  %v2863_v18 = vrot.slane %v373_v12, %v2840_v9  ;;  %v2881_v29 = vrot.slane %v2467_v19, %v2843_v10  ;;  %v2898_v37 = vrot.slane %v2467_v19, %v2840_v9  ;;  %v2482_v57 = vld [vmem:[%s3197_s1 + $0xc] sm:$0x3]  ;;  %v787_v0 = vld [vmem:[#allocation3 + $0x20] sm:$0xff] }
  0x35   : > { %v2904_v40 = vrot.slane %v2471_v35, %v2843_v10  ;;  %v2914_v46 = vrot.slane %v2471_v35, %v2840_v9  ;;  %v2930_v53 = vrot.slane %v2478_v50, %v2843_v10  ;;  %vm978_vm7 = vcmp.lt.s32.totalorder %v2837_v8, 113  ;;  %v1103_v35 = vld [vmem:[#allocation3 + $0x38] sm:$0xff] }
  0x36   : > { %v2944_v60 = vrot.slane %v2478_v50, %v2840_v9  ;;  %v2950_v62 = vrot.slane %v2482_v57, %v2843_v10  ;;  %vm1084_vm8 = vcmp.lt.s32.totalorder %v2837_v8, 112  ;;  %v2964_v12 = vrot.slane %v2482_v57, %v2840_v9 }
  0x37   : > { %390 = vrot.lane.b32.xlu0 %v2800_v3, %s2674_s13  ;;  %366 = vrot.lane.b32.xlu1 %v2800_v3, %s2675_s7  ;;  %vm1190_vm9 = vcmp.lt.s32.totalorder %v2837_v8, 111  ;;  %vm1348_vm12 = vcmask 64512   ;;  %v2521_v8 = vld [vmem:[%s3200_s4 + $0x78] sm:$0xff] }
  0x3b   : > { %576 = vrot.lane.b32.xlu1 %v2800_v3, %s2676_s14  ;;  %574 = vrot.lane.b32.xlu0 %v2792_v2, %s2676_s14 }
  0x3f   : > { %682 = vrot.lane.b32.xlu1 %v2800_v3, %s2677_s15  ;;  %680 = vrot.lane.b32.xlu0 %v2792_v2, %s2677_s15 }
  0x43   : > { %870 = vrot.lane.b32.xlu1 %v2800_v3, %s2678_s16  ;;  %868 = vrot.lane.b32.xlu0 %v2792_v2, %s2678_s16 }
  0x47   : > { %976 = vrot.lane.b32.xlu1 %v2800_v3, %s2679_s17  ;;  %974 = vrot.lane.b32.xlu0 %v2792_v2, %s2679_s17 }
  0x4b   : > { %1082 = vrot.lane.b32.xlu1 %v2800_v3, %s2680_s18  ;;  %1080 = vrot.lane.b32.xlu0 %v2792_v2, %s2680_s18 }
  0x4f   : > { %1188 = vrot.lane.b32.xlu1 %v2800_v3, %s2681_s19  ;;  %1186 = vrot.lane.b32.xlu0 %v2792_v2, %s2681_s19 }
  0x53   : > { %1294 = vperm.xlu0 %2613, %v360_v4   ;;  %v2486_v4 = vld [vmem:[%s3197_s1 + $0xe] sm:$0x3] }
  0xa5   : > { %v389_v13 = vpop.permute.xlu0 %388  ;;  %v365_v14 = vpop.permute.xlu1 %364 }
  0xa9   : > { %v391_v20 = vpop.permute.xlu0 %390  ;;  %v367_v21 = vpop.permute.xlu1 %366 }
  0xaa   : > { %v393_v22 = vsel %vm392_vm0, %v389_v13, %v391_v20  ;;  %v394_v23 = vsel %vm392_vm0, %v391_v20, %v389_v13  ;;  %v371_v24 = vsel %vm370_vm1, %v365_v14, %v367_v21  ;;  %v372_v25 = vsel %vm370_vm1, %v367_v21, %v365_v14  ;;  %v891_v20 = vld [vmem:[#allocation3 + $0x28] sm:$0xff] }
  0xab   : > { %v408_v26 = vmul.f32 %v2853_v15, %v394_v23  ;;  %v386_v27 = vmul.f32 %v2857_v16, %v371_v24  ;;  %v409_v28 = vmul.f32 %v2860_v17, %v393_v22  ;;  %v385_v30 = vmul.f32 %v2863_v18, %v372_v25  ;;  %v2490_v23 = vld [vmem:[%s3197_s1 + $0x10] sm:$0x3] }
  0xac   : > { %v2970_v14 = vrot.slane %v2486_v4, %v2843_v10 }
  0xad   : > { %2461 = vmatprep.subr.msk.mxu0 %vm416_vm2, %v409_v28  ;;  %v577_v32 = vpop.permute.xlu1 %576  ;;  %v575_v33 = vpop.permute.xlu0 %574  ;;  %v2990_v28 = vrot.slane %v2490_v23, %v2843_v10 }
  0xae   : > { %2462 = vmatpush1.msk.msra.mxu0 %vm416_vm2, %v408_v26  ;;  %v579_v34 = vsel %vm578_vm3, %v575_v33, %v577_v32  ;;  %v580_v38 = vsel %vm578_vm3, %v577_v32, %v575_v33  ;;  %v2984_v26 = vrot.slane %v2486_v4, %v2840_v9 }
  0xaf   : > { %2463 = vmatmul.mubr.msk.f32.vlgmr.msra.gmra.mrb[0].mxu0 %vm412_vm4, %v411_v31  ;;  %2464 = vmatprep.subr.msk.mxu0 %vm416_vm2, %v386_v27  ;;  %v595_v36 = vmul.f32 %v2881_v29, %v579_v34  ;;  %v594_v44 = vmul.f32 %v2898_v37, %v580_v38  ;;  %v997_v31 = vld [vmem:[#allocation3 + $0x30] sm:$0xff]  ;;  %v3000_v34 = vrot.slane %v2490_v23, %v2840_v9  ;;  %v1209_v38 = vld [vmem:[#allocation3 + $0x40] sm:$0xff] }
  0xb0   : > { %2465 = vmatpush1.msk.msra.mxu0 %vm416_vm2, %v385_v30  ;;  %567 = vmatprep.mubr.f32.mxu0 %v2673_v1 }
  0xb1   : > { %2468 = vmatprep.subr.msk.mxu0 %vm416_vm2, %v595_v36  ;;  %v683_v39 = vpop.permute.xlu1 %682  ;;  %v681_v41 = vpop.permute.xlu0 %680 }
  0xb2   : > { %v685_v42 = vsel %vm684_vm5, %v681_v41, %v683_v39  ;;  %v686_v47 = vsel %vm684_vm5, %v683_v39, %v681_v41 }
  0xb3   : > { %v701_v45 = vmul.f32 %v2904_v40, %v685_v42  ;;  %v700_v49 = vmul.f32 %v2914_v46, %v686_v47 }
  0xb5   : > { %v871_v51 = vpop.permute.xlu1 %870  ;;  %v869_v52 = vpop.permute.xlu0 %868 }
  0xb6   : > { %v874_v54 = vsel %vm872_vm6, %v871_v51, %v869_v52  ;;  %v873_v61 = vsel %vm872_vm6, %v869_v52, %v871_v51 }
  0xb7   : > { %2466 = vmatmul.mubr.msk.f32.vlgmr.msra.gmra.mrb[0].mxu0 %vm412_vm4, %v387_v43  ;;  %v889_v56 = vmul.f32 %v2930_v53, %v874_v54 }
  0xb8   : > { %2469 = vmatpush1.msk.msra.mxu0 %vm416_vm2, %v594_v44  ;;  %671 = vmatprep.mubr.f32.mxu0 %v2673_v1 }
  0xb9   : > { %2472 = vmatprep.subr.msk.mxu0 %vm416_vm2, %v701_v45  ;;  %v977_v58 = vpop.permute.xlu1 %976  ;;  %v975_v59 = vpop.permute.xlu0 %974 }
  0xba   : > { %v980_v63 = vsel %vm978_vm7, %v977_v58, %v975_v59  ;;  %v979_v13 = vsel %vm978_vm7, %v975_v59, %v977_v58 }
  0xbb   : > { %v994_v21 = vmul.f32 %v2964_v12, %v979_v13  ;;  %v1325_v13 = vld [vmem:[%s3201_s5] sm:$0xff] }
  0xbd   : > { %v1083_v5 = vpop.permute.xlu1 %1082  ;;  %v1081_v11 = vpop.permute.xlu0 %1080 }
  0xbe   : > { %v1086_v19 = vsel %vm1084_vm8, %v1083_v5, %v1081_v11  ;;  %v1085_v27 = vsel %vm1084_vm8, %v1081_v11, %v1083_v5 }
  0xbf   : > { %2470 = vmatmul.mubr.msk.f32.vlgmr.msra.gmra.mrb[0].mxu0 %vm412_vm4, %v597_v48  ;;  %v1101_v22 = vmul.f32 %v2970_v14, %v1086_v19  ;;  %v1100_v32 = vmul.f32 %v2984_v26, %v1085_v27  ;;  %v1326_v19 = vld [vmem:[%s3201_s5 + $0x8] sm:$0xff]  ;;  %v2500_v27 = vld [vmem:[%s3200_s4 + $0x20] sm:$0xff] }
  0xc0   : > { %2473 = vmatpush1.msk.msra.mxu0 %vm416_vm2, %v700_v49  ;;  %777 = vmatprep.mubr.f32.mxu0 %v2673_v1 }
  0xc1   : > { %2475 = vmatprep.subr.msk.mxu0 %vm416_vm2, %v2800_v3  ;;  %v888_v3 = vmul.f32 %v2944_v60, %v873_v61  ;;  %v1189_v24 = vpop.permute.xlu1 %1188  ;;  %v1187_v25 = vpop.permute.xlu0 %1186 }
  0xc2   : > { %v1192_v30 = vsel %vm1190_vm9, %v1189_v24, %v1187_v25  ;;  %v1191_v10 = vsel %vm1190_vm9, %v1187_v25, %v1189_v24 }
  0xc3   : > { %v1207_v33 = vmul.f32 %v2990_v28, %v1192_v30  ;;  %v1206_v36 = vmul.f32 %v3000_v34, %v1191_v10 }
  0xc7   : > { %2474 = vmatmul.mubr.msk.f32.vlgmr.msra.gmra.mrb[0].mxu0 %vm412_vm4, %v703_v55 }
  0xc8   : > { %2476 = vmatpush1.msk.msra.mxu0 %vm416_vm2, %v2792_v2  ;;  %859 = vmatprep.mubr.f32.mxu0 %v2673_v1  ;;  %v995_v2 = vmul.f32 %v2950_v62, %v980_v63 }
  0xc9   : > { %2479 = vmatprep.subr.msk.mxu0 %vm416_vm2, %v889_v56 }
  0xcf   : > { %2477 = vmatmul.mubr.msk.f32.vlgmr.msra.gmra.mrb[0].mxu0 %vm412_vm4, %v787_v0 }
  0xd0   : > { %2480 = vmatpush1.msk.msra.mxu0 %vm416_vm2, %v888_v3  ;;  %965 = vmatprep.mubr.f32.mxu0 %v2673_v1 }
  0xd1   : > { %2483 = vmatprep.subr.msk.mxu0 %vm416_vm2, %v995_v2 }
  0xd2   : > { %v1295_v39 = vpop.permute.xlu0 %1294 }
  0xd7   : > { %2481 = vmatmul.mubr.msk.f32.vlgmr.msra.gmra.mrb[0].mxu0 %vm412_vm4, %v891_v20 }
  0xd8   : > { %2484 = vmatpush1.msk.msra.mxu0 %vm416_vm2, %v994_v21  ;;  %1071 = vmatprep.mubr.f32.mxu0 %v2673_v1 }
  0xd9   : > { %2487 = vmatprep.subr.msk.mxu0 %vm416_vm2, %v1101_v22 }
  0xdf   : > { %2485 = vmatmul.mubr.msk.f32.vlgmr.msra.gmra.mrb[0].mxu0 %vm412_vm4, %v997_v31 }
  0xe0   : > { %2488 = vmatpush1.msk.msra.mxu0 %vm416_vm2, %v1100_v32  ;;  %1177 = vmatprep.mubr.f32.mxu0 %v2673_v1  ;;  %v2501_v32 = vld [vmem:[%s3200_s4 + $0x28] sm:$0xff] }
  0xe1   : > { %2491 = vmatprep.subr.msk.mxu0 %vm416_vm2, %v1207_v33 }
  0xe7   : > { %2489 = vmatmul.mubr.msk.f32.vlgmr.msra.gmra.mrb[0].mxu0 %vm412_vm4, %v1103_v35 }
  0xe8   : > { %2492 = vmatpush1.msk.msra.mxu0 %vm416_vm2, %v1206_v36  ;;  %1283 = vmatprep.mubr.f32.mxu0 %v2673_v1 }
  0xef   : > { %2493 = vmatmul.mubr.msk.f32.vlgmr.msra.gmra.mrb[0].mxu0 %vm412_vm4, %v1209_v38  ;;  %v2504_v38 = vld [vmem:[%s3200_s4 + $0x30] sm:$0xff] }
  0xf0   : > { %1419 = vmatprep.mubr.f32.mxu0 %v2673_v1 }
 0x1c2   : > { %v1285_v41 = vpop.f32.mrb[0].mxu0 }
 0x1c3   : > { %v1297_v42 = vadd.f32 %v1295_v39, %v1285_v41  ;;  %v1287_v43 = vpop.f32.mrb[1].mxu0 }
 0x1c4   : > { %v1298_v44 = vadd.f32 %v1295_v39, %v1287_v43 }
 0x1c5   : > { %v1304_v45 = vmul.f32 %v1297_v42, %v1297_v42 }
 0x1c6   : > { %v1299_v47 = vadd.f32 %v1298_v44, %v1297_v42  ;;  %v1305_v48 = vmul.f32 %v1298_v44, %v1298_v44 }
 0x1c8   : > { %1300 = vadd.xlane.f32.xlu1 %v1299_v47  ;;  %v1306_v49 = vadd.f32 %v1305_v48, %v1304_v45  ;;  %v2508_v45 = vld [vmem:[%s3200_s4 + $0x40] sm:$0xff] }
 0x1ca   : > { %1307 = vadd.xlane.f32.xlu0 %v1306_v49 }
 0x255   : > { %v1301_v50 = vpop.xlane.xlu1 %1300 }
 0x256   : > { %v1303_v51 = vmul.f32 0.00390625, %v1301_v50 }
 0x257   : > { %v1308_v52 = vpop.xlane.xlu0 %1307 }
 0x258   : > { %v1309_v54 = vmul.f32 0.00390625, %v1308_v52  ;;  %v1310_v55 = vmul.f32 %v1303_v51, %v1303_v51  ;;  %v1313_v59 = vsub.f32 %v1297_v42, %v1303_v51  ;;  %v1314_v61 = vsub.f32 %v1298_v44, %v1303_v51 }
 0x25a   : > { %v1311_v56 = vsub.f32 %v1309_v54, %v1310_v55 }
 0x25c   : > { %v1312_v57 = vmax.f32 %v1311_v56, 0.0  ;;  %v2494_v56 = vld [vmem:[%s3200_s4 + $0x10] sm:$0xff] }
 0x25e   : > { %v1315_v58 = vadd.f32 1e-05, %v1312_v57  ;;  %v2512_v57 = vld [vmem:[%s3200_s4 + $0x50] sm:$0xff] }
 0x260   : > { %2616 = vrsqrt.f32 %v1315_v58  ;;  %v2495_v58 = vld [vmem:[%s3200_s4 + $0x18] sm:$0xff] }
 0x26a   : > { %v2617_v63 = vpop.eup %2616 }
 0x26b   : > { %v1317_v0 = vmul.f32 %v2617_v63, %v1313_v59  ;;  %v1318_v3 = vmul.f32 %v2617_v63, %v1314_v61 }
 0x26d   : > { %vm1319_vm10 = vcmp.ge.f32.partialorder %v1317_v0, 0.0  ;;  %vm1320_vm11 = vcmp.ge.f32.partialorder %v1318_v3, 0.0  ;;  %v1321_v2 = vmul.f32 0.2, %v1317_v0  ;;  %v1322_v4 = vmul.f32 0.2, %v1318_v3 }
 0x26f   : > { %v1323_v5 = vsel %vm1319_vm10, %v1317_v0, %v1321_v2  ;;  %v1324_v11 = vsel %vm1320_vm11, %v1318_v3, %v1322_v4 }
 0x270   : > { %1517 = vrot.lane.b32.xlu0 %v1324_v11, %s2676_s14  ;;  %1515 = vrot.lane.b32.xlu1 %v1323_v5, %s2676_s14 }
 0x274   : > { %1801 = vrot.lane.b32.xlu0 %v1323_v5, %s2678_s16  ;;  %1613 = vrot.lane.b32.xlu1 %v1323_v5, %s2677_s15 }
 0x278   : > { %1899 = vrot.lane.b32.xlu0 %v1323_v5, %s2679_s17  ;;  %1615 = vrot.lane.b32.xlu1 %v1324_v11, %s2677_s15 }
 0x27c   : > { %1337 = vrot.lane.b32.xlu0 %v1323_v5, %s2674_s13  ;;  %1803 = vrot.lane.b32.xlu1 %v1324_v11, %s2678_s16 }
 0x280   : > { %1997 = vrot.lane.b32.xlu0 %v1323_v5, %s2680_s18  ;;  %1901 = vrot.lane.b32.xlu1 %v1324_v11, %s2679_s17 }
 0x284   : > { %1327 = vrot.lane.b32.xlu0 %v1323_v5, %s2675_s7  ;;  %1339 = vrot.lane.b32.xlu1 %v1324_v11, %s2674_s13  ;;  %s2458_s13 = sshll.u32 %s3216_s12, 1 }
 0x285   : > { %s358_s27 = scalar_lea.vmem %s3205_s9, %s2458_s13 }
 0x288   : > { %2095 = vrot.lane.b32.xlu0 %v1323_v5, %s2681_s19  ;;  %1999 = vrot.lane.b32.xlu1 %v1324_v11, %s2680_s18  ;;  %s354_s18 = scalar_lea.vmem %s3204_s8, %s2458_s13 }
 0x28c   : > { %2195 = vperm.xlu0 %2613, %v1325_v13   ;;  %1329 = vrot.lane.b32.xlu1 %v1324_v11, %s2675_s7 }
 0x290   : > { %2097 = vrot.lane.b32.xlu1 %v1324_v11, %s2681_s19 }
 0x294   : > { %2200 = vperm.xlu1 %2614, %v1326_v19   ;;  %v2516_v19 = vld [vmem:[%s3200_s4 + $0x60] sm:$0xff] }
 0x2e2   : > { %v1518_v20 = vpop.permute.xlu0 %1517  ;;  %v1516_v21 = vpop.permute.xlu1 %1515 }
 0x2e3   : > { %v1520_v22 = vsel %vm578_vm3, %v1518_v20, %v1516_v21  ;;  %v1519_v23 = vsel %vm578_vm3, %v1516_v21, %v1518_v20  ;;  %v1336_v20 = vld [vmem:[%s3200_s4 + $0x8] sm:$0xff] }
 0x2e4   : > { %v1522_v24 = vmul.f32 %v1519_v23, %v2881_v29  ;;  %v1521_v25 = vmul.f32 %v1520_v22, %v2898_v37  ;;  %v2517_v23 = vld [vmem:[%s3200_s4 + $0x68] sm:$0xff] }
 0x2e6   : > { %v1802_v30 = vpop.permute.xlu0 %1801  ;;  %1532 = vmatprep.subr.mxu1 %v1522_v24  ;;  %v1614_v31 = vpop.permute.xlu1 %1613 }
 0x2e7   : > { %1533 = vmatpush1.msra.mxu1 %v1521_v25  ;;  %v2524_v25 = vld [vmem:[%s3200_s4 + $0x80] sm:$0xff] }
 0x2e8   : > { %2502 = vmatmul.mubr.msk.f32.vlgmr.msra.gmra.mrb[0].mxu1 %vm1348_vm12, %v2500_v27 }
 0x2e9   : > { %1602 = vmatprep.mubr.f32.mxu1 %v2673_v1 }
 0x2ea   : > { %v1616_v29 = vpop.permute.xlu1 %1615  ;;  %v1900_v10 = vpop.permute.xlu0 %1899 }
 0x2eb   : > { %v1617_v37 = vsel %vm684_vm5, %v1614_v31, %v1616_v29  ;;  %v1618_v33 = vsel %vm684_vm5, %v1616_v29, %v1614_v31 }
 0x2ec   : > { %v1619_v35 = vmul.f32 %v1618_v33, %v2914_v46  ;;  %v1620_v36 = vmul.f32 %v1617_v37, %v2904_v40  ;;  %2503 = vmatmul.mubr.msk.f32.gmra.mrb[2].mxu1 %vm1348_vm12, %v2501_v32  ;;  %v2505_v40 = vld [vmem:[%s3200_s4 + $0x38] sm:$0xff] }
 0x2ed   : > { %1694 = vmatprep.mubr.f32.mxu1 %v2673_v1 }
 0x2ee   : > { %1630 = vmatprep.subr.mxu1 %v1620_v36  ;;  %v1804_v39 = vpop.permute.xlu1 %1803  ;;  %v1338_v46 = vpop.permute.xlu0 %1337 }
 0x2ef   : > { %v1806_v41 = vsel %vm872_vm6, %v1804_v39, %v1802_v30  ;;  %1631 = vmatpush1.msra.mxu1 %v1619_v35  ;;  %v1805_v44 = vsel %vm872_vm6, %v1802_v30, %v1804_v39 }
 0x2f0   : > { %v1808_v42 = vmul.f32 %v1806_v41, %v2930_v53  ;;  %2506 = vmatmul.mubr.msk.f32.vlgmr.msra.gmra.mrb[0].mxu1 %vm1348_vm12, %v2504_v38  ;;  %1720 = vmatprep.subr.mxu1 %v1324_v11  ;;  %v1807_v48 = vmul.f32 %v1805_v44, %v2944_v60  ;;  %v2509_v60 = vld [vmem:[%s3200_s4 + $0x48] sm:$0xff]  ;;  %v1335_v11 = vld [vmem:[%s3200_s4] sm:$0xff] }
 0x2f1   : > { %1721 = vmatpush1.msra.mxu1 %v1323_v5  ;;  %1700 = vmatprep.mubr.f32.mxu1 %v2673_v1 }
 0x2f2   : > { %1818 = vmatprep.subr.mxu1 %v1808_v42  ;;  %v1902_v43 = vpop.permute.xlu1 %1901  ;;  %v1998_v51 = vpop.permute.xlu0 %1997 }
 0x2f3   : > { %v1904_v53 = vsel %vm978_vm7, %v1902_v43, %v1900_v10 }
 0x2f4   : > { %2507 = vmatmul.mubr.msk.f32.gmra.mrb[2].mxu1 %vm1348_vm12, %v2505_v40  ;;  %v1906_v52 = vmul.f32 %v1904_v53, %v2950_v62 }
 0x2f5   : > { %1784 = vmatprep.mubr.f32.mxu1 %v2673_v1 }
 0x2f6   : > { %v1340_v47 = vpop.permute.xlu1 %1339  ;;  %v1328_v59 = vpop.permute.xlu0 %1327 }
 0x2f7   : > { %v1341_v49 = vsel %vm392_vm0, %v1338_v46, %v1340_v47  ;;  %v1342_v50 = vsel %vm392_vm0, %v1340_v47, %v1338_v46 }
 0x2f8   : > { %v1343_v54 = vmul.f32 %v1342_v50, %v2853_v15  ;;  %v1344_v55 = vmul.f32 %v1341_v49, %v2860_v17  ;;  %2510 = vmatmul.mubr.msk.f32.vlgmr.msra.gmra.mrb[0].mxu1 %vm1348_vm12, %v2508_v45  ;;  %v1903_v15 = vsel %vm978_vm7, %v1900_v10, %v1902_v43 }
 0x2f9   : > { %1819 = vmatpush1.msra.mxu1 %v1807_v48  ;;  %1790 = vmatprep.mubr.f32.mxu1 %v2673_v1  ;;  %v1905_v63 = vmul.f32 %v1903_v15, %v2964_v12  ;;  %v2513_v12 = vld [vmem:[%s3200_s4 + $0x58] sm:$0xff] }
 0x2fa   : > { %1916 = vmatprep.subr.mxu1 %v1906_v52  ;;  %1355 = vmatprep.subr.mxu0 %v1344_v55  ;;  %v2000_v62 = vpop.permute.xlu1 %1999  ;;  %v2257_v52 = vld [vmem:[%s3202_s6] sm:$0xff]  ;;  %v2258_v55 = vld [vmem:[%s3202_s6 + $0x8] sm:$0xff] }
 0x2fb   : > { %1356 = vmatpush1.msra.mxu0 %v1343_v54  ;;  %v2002_v17 = vsel %vm1084_vm8, %v2000_v62, %v1998_v51  ;;  %v2287_v54 = vld [vmem:[#allocation2] sm:$0x1] }
 0x2fc   : > { %2511 = vmatmul.mubr.msk.f32.gmra.mrb[2].mxu1 %vm1348_vm12, %v2509_v60  ;;  %2496 = vmatmul.mubr.msk.f32.vlgmr.msra.gmra.mrb[2].mxu0 %vm1348_vm12, %v2494_v56  ;;  %v2004_v2 = vmul.f32 %v2002_v17, %v2970_v14  ;;  %v2001_v14 = vsel %vm1084_vm8, %v1998_v51, %v2000_v62 }
 0x2fd   : > { %1882 = vmatprep.mubr.f32.mxu1 %v2673_v1  ;;  %1425 = vmatprep.mubr.f32.mxu0 %v2673_v1  ;;  %v2003_v21 = vmul.f32 %v2001_v14, %v2984_v26  ;;  %v2520_v26 = vld [vmem:[%s3200_s4 + $0x70] sm:$0xff] }
 0x2fe   : > { %v1330_v61 = vpop.permute.xlu1 %1329 }
 0x2ff   : > { %v1331_v0 = vsel %vm370_vm1, %v1328_v59, %v1330_v61  ;;  %v1332_v3 = vsel %vm370_vm1, %v1330_v61, %v1328_v59  ;;  %vm3182_vm1 = vcmp.lt.s32.totalorder %v368_v6, 256 }
 0x300   : > { %v1333_v4 = vmul.f32 %v1332_v3, %v2863_v18  ;;  %v1334_v5 = vmul.f32 %v1331_v0, %v2857_v16  ;;  %2514 = vmatmul.mubr.msk.f32.vlgmr.msra.gmra.mrb[0].mxu1 %vm1348_vm12, %v2512_v57  ;;  %2497 = vmatmul.mubr.msk.f32.gmra.mrb[4].mxu0 %vm1348_vm12, %v2495_v58  ;;  %v2096_v16 = vpop.permute.xlu0 %2095 }
 0x301   : > { %1917 = vmatpush1.msra.mxu1 %v1905_v63  ;;  %1888 = vmatprep.mubr.f32.mxu1 %v2673_v1 }
 0x302   : > { %2014 = vmatprep.subr.mxu1 %v2004_v2  ;;  %1438 = vmatprep.subr.mxu0 %v1334_v5  ;;  %v2098_v18 = vpop.permute.xlu1 %2097 }
 0x303   : > { %1439 = vmatpush1.msra.mxu0 %v1333_v4  ;;  %1502 = vmatprep.mubr.f32.mxu0 %v2673_v1  ;;  %v2100_v13 = vsel %vm1190_vm9, %v2098_v18, %v2096_v16  ;;  %v2099_v24 = vsel %vm1190_vm9, %v2096_v16, %v2098_v18 }
 0x304   : > { %2515 = vmatmul.mubr.msk.f32.gmra.mrb[2].mxu1 %vm1348_vm12, %v2513_v12  ;;  %2498 = vmatmul.mubr.msk.f32.vlgmr.msra.gmra.mrb[2].mxu0 %vm1348_vm12, %v1335_v11  ;;  %v2102_v22 = vmul.f32 %v2100_v13, %v2990_v28  ;;  %v2101_v28 = vmul.f32 %v2099_v24, %v3000_v34  ;;  %v2525_v34 = vld [vmem:[%s3200_s4 + $0x88] sm:$0xff] }
 0x305   : > { %1980 = vmatprep.mubr.f32.mxu1 %v2673_v1  ;;  %1508 = vmatprep.mubr.f32.mxu0 %v2673_v1 }
 0x308   : > { %2518 = vmatmul.mubr.msk.f32.vlgmr.msra.gmra.mrb[0].mxu1 %vm1348_vm12, %v2516_v19  ;;  %2499 = vmatmul.mubr.msk.f32.gmra.mrb[4].mxu0 %vm1348_vm12, %v1336_v20 }
 0x309   : > { %2015 = vmatpush1.msra.mxu1 %v2003_v21  ;;  %1986 = vmatprep.mubr.f32.mxu1 %v2673_v1 }
 0x30a   : > { %2112 = vmatprep.subr.mxu1 %v2102_v22 }
 0x30b   : > { %v2196_v10 = vpop.permute.xlu0 %2195 }
 0x30c   : > { %2519 = vmatmul.mubr.msk.f32.gmra.mrb[2].mxu1 %vm1348_vm12, %v2517_v23 }
 0x30d   : > { %2078 = vmatprep.mubr.f32.mxu1 %v2673_v1 }
 0x310   : > { %2522 = vmatmul.mubr.msk.f32.vlgmr.msra.gmra.mrb[0].mxu1 %vm1348_vm12, %v2520_v26 }
 0x311   : > { %2113 = vmatpush1.msra.mxu1 %v2101_v28  ;;  %2084 = vmatprep.mubr.f32.mxu1 %v2673_v1 }
 0x313   : > { %v2201_v41 = vpop.permute.xlu1 %2200 }
 0x314   : > { %2523 = vmatmul.mubr.msk.f32.gmra.mrb[2].mxu1 %vm1348_vm12, %v2521_v8 }
 0x315   : > { %2176 = vmatprep.mubr.f32.mxu1 %v2673_v1 }
 0x318   : > { %2526 = vmatmul.mubr.msk.f32.vlgmr.msra.gmra.mrb[0].mxu1 %vm1348_vm12, %v2524_v25 }
 0x319   : > { %2182 = vmatprep.mubr.f32.mxu1 %v2673_v1 }
 0x31c   : > { %2527 = vmatmul.mubr.msk.f32.gmra.mrb[2].mxu1 %vm1348_vm12, %v2525_v34 }
 0x3d7   : > { %v1504_v27 = vpop.f32.mrb[2].mxu0 }
 0x3d8   : > { %v1506_v30 = vpop.f32.mrb[3].mxu0 }
 0x3db   : > { %v1510_v31 = vpop.f32.mrb[4].mxu0 }
 0x3dc   : > { %v1512_v32 = vpop.f32.mrb[5].mxu0 }
 0x3eb   : > { %v2178_v29 = vpop.f32.mrb[0].mxu1 }
 0x3ec   : > { %v2533_v37 = vadd.f32 %v2178_v29, %v1504_v27  ;;  %v2180_v33 = vpop.f32.mrb[1].mxu1 }
 0x3ed   : > { %v2534_v35 = vadd.f32 %v2180_v33, %v1506_v30 }
 0x3ee   : > { %v2203_v36 = vadd.f32 %v2533_v37, %v2196_v10 }
 0x3ef   : > { %v2204_v38 = vadd.f32 %v2534_v35, %v2196_v10  ;;  %v2184_v39 = vpop.f32.mrb[2].mxu1 }
 0x3f0   : > { %v2535_v1 = vadd.f32 %v2184_v39, %v1510_v31  ;;  %v2186_v42 = vpop.f32.mrb[3].mxu1  ;;  %v2215_v43 = vmul.f32 %v2203_v36, %v2203_v36 }
 0x3f1   : > { %v2536_v40 = vadd.f32 %v2186_v42, %v1512_v32  ;;  %v2207_v46 = vadd.f32 %v2204_v38, %v2203_v36  ;;  %v2216_v44 = vmul.f32 %v2204_v38, %v2204_v38  ;;  %v2683_v42 = vmov 1966171168  }
 0x3f2   : > { %v2205_v53 = vadd.f32 %v2535_v1, %v2201_v41 }
 0x3f3   : > { %v2206_v45 = vadd.f32 %v2536_v40, %v2201_v41  ;;  %2208 = vadd.xlane.f32.xlu0 %v2207_v46  ;;  %v2219_v47 = vadd.f32 %v2216_v44, %v2215_v43  ;;  %v2303_v40 = vunpack.c.l.s4 %v2683_v42 }
 0x3f4   : > { %v2217_v49 = vmul.f32 %v2205_v53, %v2205_v53 }
 0x3f5   : > { %v2210_v48 = vadd.f32 %v2206_v45, %v2205_v53  ;;  %v2218_v50 = vmul.f32 %v2206_v45, %v2206_v45 }
 0x3f7   : > { %2220 = vadd.xlane.f32.xlu0 %v2219_v47  ;;  %2211 = vadd.xlane.f32.xlu1 %v2210_v48  ;;  %v2222_v51 = vadd.f32 %v2218_v50, %v2217_v49  ;;  %v2304_v47 = vunpack.c.0.s8 %v2303_v40 }
 0x3fb   : > { %2223 = vadd.xlane.f32.xlu0 %v2222_v51 }
 0x408   : > { %2261 = vperm.xlu1 %2614, %v2257_v52  }
 0x40c   : > { %2290 = vperm.xlu1 %2614, %v2287_v54   ;;  %v2307_v54 = vsub.s32 %v2304_v47, %v2834_v7 }
 0x411   : > { %2266 = vperm.xlu0 %2613, %v2258_v55  }
 0x480   : > { %v2209_v60 = vpop.xlane.xlu0 %2208 }
 0x481   : > { %v2213_v56 = vmul.f32 0.00390625, %v2209_v60 }
 0x483   : > { %v2227_v17 = vmul.f32 %v2213_v56, %v2213_v56  ;;  %v2233_v11 = vsub.f32 %v2203_v36, %v2213_v56  ;;  %v2234_v18 = vsub.f32 %v2204_v38, %v2213_v56 }
 0x484   : > { %v2221_v62 = vpop.xlane.xlu0 %2220  ;;  %v2212_v15 = vpop.xlane.xlu1 %2211 }
 0x485   : > { %v2225_v57 = vmul.f32 0.00390625, %v2221_v62  ;;  %v2214_v58 = vmul.f32 0.00390625, %v2212_v15 }
 0x487   : > { %v2229_v59 = vsub.f32 %v2225_v57, %v2227_v17  ;;  %v2228_v3 = vmul.f32 %v2214_v58, %v2214_v58  ;;  %v2235_v19 = vsub.f32 %v2205_v53, %v2214_v58  ;;  %v2236_v20 = vsub.f32 %v2206_v45, %v2214_v58 }
 0x488   : > { %v2224_v61 = vpop.xlane.xlu0 %2223  ;;  %v2262_v27 = vpop.permute.xlu1 %2261 }
 0x489   : > { %v2231_v63 = vmax.f32 %v2229_v59, 0.0  ;;  %v2226_v0 = vmul.f32 0.00390625, %v2224_v61 }
 0x48b   : > { %v2237_v2 = vadd.f32 1e-05, %v2231_v63  ;;  %v2230_v4 = vsub.f32 %v2226_v0, %v2228_v3 }
 0x48c   : > { %v2291_v45 = vpop.permute.xlu1 %2290 }
 0x48d   : > { %2618 = vrsqrt.f32 %v2237_v2  ;;  %v2232_v5 = vmax.f32 %v2230_v4, 0.0  ;;  %v2296_v50 = vrot.slane %v2291_v45, %v2840_v9 }
 0x48f   : > { %v2238_v12 = vadd.f32 1e-05, %v2232_v5 }
 0x490   : > { %v2267_v30 = vpop.permute.xlu0 %2266 }
 0x491   : > { %2620 = vrsqrt.f32 %v2238_v12 }
 0x497   : > { %v2619_v16 = vpop.eup %2618 }
 0x498   : > { %v2241_v14 = vmul.f32 %v2619_v16, %v2233_v11  ;;  %v2242_v13 = vmul.f32 %v2619_v16, %v2234_v18 }
 0x49a   : > { %vm2245_vm13 = vcmp.ge.f32.partialorder %v2241_v14, 0.0  ;;  %vm2246_vm14 = vcmp.ge.f32.partialorder %v2242_v13, 0.0  ;;  %v2249_v21 = vmul.f32 0.2, %v2241_v14  ;;  %v2250_v22 = vmul.f32 0.2, %v2242_v13 }
 0x49b   : > { %v2621_v23 = vpop.eup %2620 }
 0x49c   : > { %v2243_v24 = vmul.f32 %v2621_v23, %v2235_v19  ;;  %v2244_v26 = vmul.f32 %v2621_v23, %v2236_v20  ;;  %v2253_v28 = vsel %vm2245_vm13, %v2241_v14, %v2249_v21  ;;  %v2254_v8 = vsel %vm2246_vm14, %v2242_v13, %v2250_v22 }
 0x49d   : > { %v2269_v29 = vmul.f32 %v2262_v27, %v2253_v28  ;;  %v2270_v37 = vmul.f32 %v2262_v27, %v2254_v8 }
 0x49e   : > { %vm2247_vm15 = vcmp.ge.f32.partialorder %v2243_v24, 0.0  ;;  %vm2248_vm0 = vcmp.ge.f32.partialorder %v2244_v26, 0.0  ;;  %v2251_v25 = vmul.f32 0.2, %v2243_v24  ;;  %v2252_v34 = vmul.f32 0.2, %v2244_v26 }
 0x4a0   : > { %v2255_v31 = vsel %vm2247_vm15, %v2243_v24, %v2251_v25  ;;  %v2256_v32 = vsel %vm2248_vm0, %v2244_v26, %v2252_v34 }
 0x4a1   : > { %v2271_v33 = vmul.f32 %v2267_v30, %v2255_v31  ;;  %v2272_v10 = vmul.f32 %v2267_v30, %v2256_v32 }
 0x4a3   : > { %v2273_v35 = vadd.f32 %v2271_v33, %v2269_v29  ;;  %v2280_v36 = vadd.f32 %v2272_v10, %v2270_v37 }
 0x4a5   : > { %v2274_v38 = vrot.slane %v2273_v35, 4  ;;  %v2281_v39 = vrot.slane %v2280_v36, 4 }
 0x4a7   : > { %v2275_v41 = vadd.f32 %v2274_v38, %v2273_v35  ;;  %v2282_v1 = vadd.f32 %v2281_v39, %v2280_v36 }
 0x4a9   : > { %v2276_v46 = vrot.slane %v2275_v41, 2  ;;  %v2283_v43 = vrot.slane %v2282_v1, 2 }
 0x4ab   : > { %v2277_v44 = vadd.f32 %v2276_v46, %v2275_v41  ;;  %v2284_v53 = vadd.f32 %v2283_v43, %v2282_v1 }
 0x4ad   : > { %v2278_v48 = vrot.slane %v2277_v44, 1  ;;  %v2285_v49 = vrot.slane %v2284_v53, 1 }
 0x4af   : > { %v2279_v51 = vadd.f32 %v2278_v48, %v2277_v44  ;;  %v2286_v52 = vadd.f32 %v2285_v49, %v2284_v53 }
 0x4b1   : > { %v2297_v55 = vadd.f32 %v2296_v50, %v2279_v51  ;;  %v2298_v60 = vadd.f32 %v2296_v50, %v2286_v52 }
 0x4b3   : > { %v2301_v56 = vcombine.low %v2297_v55, %v2298_v60  ;;  %v2528_v62 = vmul.f32 -1.442695, %v2297_v55  ;;  %v2529_v15 = vmul.f32 -1.442695, %v2298_v60 }
 0x4b5   : > { %v2308_v17 = vrot.slane %v2301_v56, %v2307_v54  ;;  %2622 = vpow2.f32 %v2528_v62 }
 0x4b6   : > { %2624 = vpow2.f32 %v2529_v15 }
 0x4b7   : > { %v2315_v9 = vrot.slane %v2308_v17, %v2307_v54 }
 0x4b9   : > { %2321 = vst.msk [vmem:[%s354_s18] sm:$0x3] %vm3182_vm1, %v2315_v9 }
 0x4bf   : > { %v2623_v7 = vpop.eup %2622 }
 0x4c0   : > { %v2625_v58 = vpop.eup %2624  ;;  %v2328_v59 = vadd.f32 1.0, %v2623_v7 }
 0x4c1   : > { %v2329_v61 = vadd.f32 1.0, %v2625_v58 }
 0x4c2   : > { %2626 = vrcp.f32 %v2328_v59 }
 0x4c3   : > { %2628 = vrcp.f32 %v2329_v61 }
 0x4cc   : > { %v2627_v63 = vpop.eup %2626 }
 0x4cd   : > { %v2629_v0 = vpop.eup %2628 }
 0x4ce   : > { %v2336_v3 = vcombine.low %v2627_v63, %v2629_v0 }
 0x4d0   : > { %v2343_v2 = vrot.slane %v2336_v3, %v2307_v54 }
 0x4d2   : > { %v2350_v6 = vrot.slane %v2343_v2, %v2307_v54 }
 0x4d4   : > { %2352 = vst.msk [vmem:[%s358_s27] sm:$0x3] %vm3182_vm1, %v2350_v6 }
 0x4d5 PF: > { %s23_s11 = sadd.s32 1, %s2668_s11  }
 0x4d6   : > { %p20_p3 = scmp.ge.s32.totalorder %s23_s11, 4  }
 0x4d8   :  { %22 = sbr.rel (!%p20_p3) target bundleno = 4 (0x4), region = 122 }
 0x4df   :  { %2386 = vsyncpa [#allocation4], 1 }
 0x4e0   :  { %2388 = vsyncpa [#allocation4 + $0x1], 1 }

</bundles_post_ra>
